<compile_context>
chip_gen: v7x
topology: tpu7x:2x2x1
jax: 0.10.0
libtpu: 0.0.40
codegen_flags: <defaults>
</compile_context>

<pallas_src>
import functools

import jax
import jax.numpy as jnp
from jax.experimental import pallas as pl
from jax.experimental.pallas import tpu as pltpu

nEmbd = 64
blockSize = 32
LN_EPS = 1e-5


def _layernorm_f32(x, gamma, beta):
    """LayerNorm over the last axis, in f32.  gamma/beta broadcast as (1, C)."""
    mu = jnp.mean(x, axis=-1, keepdims=True)
    xc = x - mu
    var = jnp.mean(xc * xc, axis=-1, keepdims=True)
    return xc * jax.lax.rsqrt(var + LN_EPS) * gamma + beta


def block_kernel(x_ref, vecs_ref, fb1_ref, wqkv_ref, wp_ref, w1_ref, w2_ref,
                 o_ref, *, batch, seq, num_heads, head_size):
    B, T, H, hd = batch, seq, num_heads, head_size
    N, C = x_ref.shape                      # (B*T, C), flattened tokens

    # Packed small params: rows 0..5 of a single (8, C) f32 array.
    vecs = vecs_ref[...]
    g1, b1 = vecs[0:1], vecs[1:2]
    g2, b2 = vecs[2:3], vecs[3:4]
    bp, fb2 = vecs[4:5], vecs[5:6]
    fb1 = fb1_ref[...]                      # (1, 4C) f32

    wqkv = wqkv_ref[...]                    # (C, 3C) bf16, 1/sqrt(C) folded in q
    wp = wp_ref[...]                        # (C, C)  bf16
    w1 = w1_ref[...]                        # (C, 4C) bf16
    w2 = w2_ref[...]                        # (4C, C) bf16

    x = x_ref[...].astype(jnp.float32)      # (N, C)

    # ---------------- LayerNorm 1 + multi-head self-attention ---------------
    ln1 = _layernorm_f32(x, g1, b1).astype(jnp.bfloat16)

    # One lane-dense (N, C) @ (C, 3C) bf16 MXU matmul for all heads' q, k, v.
    qkv = jnp.dot(ln1, wqkv,
                  preferred_element_type=jnp.float32).astype(jnp.bfloat16)

    # Causal mask; large finite negative so fully-masked rows cannot NaN
    # (every causal row has >=1 unmasked entry anyway).
    row = jax.lax.broadcasted_iota(jnp.int32, (T, T), 0)
    col = jax.lax.broadcasted_iota(jnp.int32, (T, T), 1)
    causal = (row >= col)[None, :, :]       # (1, T, T)
    neg_big = jnp.float32(-1e30)

    # Per-head score/softmax/p@v (tiny, unavoidable), head-sum folded into the
    # output projection so no concat / lane relayout is needed.
    attn = jnp.zeros((N, C), jnp.float32)
    for h in range(H):                      # static unroll (H = 4)
        lo = h * hd
        q_h = qkv[:, lo:lo + hd].reshape(B, T, hd)                # scaled q
        k_h = qkv[:, C + lo:C + lo + hd].reshape(B, T, hd)
        v_h = qkv[:, 2 * C + lo:2 * C + lo + hd].reshape(B, T, hd)

        s = jnp.einsum('bqd,bkd->bqk', q_h, k_h,
                       preferred_element_type=jnp.float32)        # (B, T, T)
        s = jnp.where(causal, s, neg_big)
        m = jnp.max(s, axis=-1, keepdims=True)
        p = jnp.exp(s - m)
        p = p * pl.reciprocal(jnp.sum(p, axis=-1, keepdims=True), approx=True)

        # bf16 x bf16 MXU matmul, f32 accumulation.
        o_h = jnp.einsum('bqk,bkd->bqd', p.astype(jnp.bfloat16), v_h,
                         preferred_element_type=jnp.float32)      # (B, T, hd)

        # attn += o_h @ Wp[h*hd:(h+1)*hd, :]  (sublane-aligned bf16 row slice)
        attn = attn + jnp.dot(o_h.reshape(N, hd).astype(jnp.bfloat16),
                              wp[lo:lo + hd, :],
                              preferred_element_type=jnp.float32)

    attn = attn + bp
    r1 = x + attn                            # residual 1

    # ---------------- LayerNorm 2 + FeedForward ------------------------------
    ln2 = _layernorm_f32(r1, g2, b2).astype(jnp.bfloat16)
    h1 = jnp.dot(ln2, w1, preferred_element_type=jnp.float32) + fb1
    h1 = jnp.maximum(h1, 0.0).astype(jnp.bfloat16)
    ffn = jnp.dot(h1, w2, preferred_element_type=jnp.float32) + fb2

    o_ref[...] = (r1 + ffn).astype(o_ref.dtype)


def block_forward(x, g1, b1, wq, wk, wv, wp, bp, g2, b2, w1, fb1, w2, fb2,
                  *, num_heads, head_size):
    B, T, C = x.shape
    H, hd = num_heads, head_size
    assert H * hd == C
    N = B * T
    scale = C ** (-0.5)          # module uses C (=nEmbd), not head_size
    bf = jnp.bfloat16
    f32 = jnp.float32

    # Flatten tokens in the wrapper (plain XLA) so all big matmuls in the
    # kernel run once over (B*T, C); bf16 activations/weights for MXU-native
    # matmuls and halved DMA bytes.
    x_flat = x.reshape(N, C).astype(bf)

    # Fused QKV weight, q-columns pre-scaled by 1/sqrt(C) (=1/8, exact in bf16).
    wqkv = jnp.concatenate(
        [wq.astype(f32) * scale, wk.astype(f32), wv.astype(f32)],
        axis=-1).astype(bf)                                   # (C, 3C)
    wp_bf = wp.astype(bf)                                     # (C, C)
    w1_bf = w1.astype(bf)                                     # (C, 4C)
    w2_bf = w2.astype(bf)                                     # (4C, C)

    # Pack the six (C,) f32 vectors into one (8, C) array (2 zero pad rows).
    zero = jnp.zeros((C,), f32)
    vecs = jnp.stack([g1.astype(f32), b1.astype(f32), g2.astype(f32),
                      b2.astype(f32), bp.astype(f32), fb2.astype(f32),
                      zero, zero], axis=0)                    # (8, C)
    fb1_2 = fb1.reshape(1, 4 * C).astype(f32)                 # (1, 4C)

    kern = functools.partial(block_kernel, batch=B, seq=T,
                             num_heads=H, head_size=hd)

    # Single grid step: the whole problem (~100 KB resident) fits VMEM on all
    # generations; no vmem_limit_bytes needed.  See scaling TODO at top.
    out_flat = pl.pallas_call(
        kern,
        out_shape=jax.ShapeDtypeStruct((N, C), f32),
        grid_spec=pltpu.PrefetchScalarGridSpec(
            num_scalar_prefetch=0,
            grid=(1,),
            in_specs=[
                pl.BlockSpec((N, C), lambda i: (0, 0)),        # x (flattened)
                pl.BlockSpec((8, C), lambda i: (0, 0)),        # packed vectors
                pl.BlockSpec((1, 4 * C), lambda i: (0, 0)),    # FFN bias 1
                pl.BlockSpec((C, 3 * C), lambda i: (0, 0)),    # fused Wqkv
                pl.BlockSpec((C, C), lambda i: (0, 0)),        # out-proj Wp
                pl.BlockSpec((C, 4 * C), lambda i: (0, 0)),    # FFN W1
                pl.BlockSpec((4 * C, C), lambda i: (0, 0)),    # FFN W2
            ],
            out_specs=pl.BlockSpec((N, C), lambda i: (0, 0)),
        ),
        compiler_params=pltpu.CompilerParams(
            dimension_semantics=("arbitrary",)),
    )(x_flat, vecs, fb1_2, wqkv, wp_bf, w1_bf, w2_bf)

    return out_flat.reshape(B, T, C)


def reference(x, g1, b1, wq, wk, wv, wp, bp, g2, b2, w1, fb1, w2, fb2,
              *, num_heads, head_size):
    """Pure-JAX f32 mirror of the PyTorch Block.forward (eval mode)."""
    f = lambda a: a.astype(jnp.float32)
    x = f(x)
    B, T, C = x.shape
    H, hd = num_heads, head_size
    scale = C ** (-0.5)

    ln1 = _layernorm_f32(x, f(g1).reshape(1, C), f(b1).reshape(1, C))
    q = ln1 @ f(wq)
    k = ln1 @ f(wk)
    v = ln1 @ f(wv)
    mask = jnp.tril(jnp.ones((T, T), dtype=bool))
    outs = []
    for h in range(H):
        lo, hi = h * hd, (h + 1) * hd
        s = q[..., lo:hi] @ jnp.swapaxes(k[..., lo:hi], -1, -2) * scale
        s = jnp.where(mask, s, -jnp.inf)
        w_att = jax.nn.softmax(s, axis=-1)
        outs.append(w_att @ v[..., lo:hi])
    attn = jnp.concatenate(outs, axis=-1) @ f(wp) + f(bp).reshape(1, C)
    r1 = x + attn
    ln2 = _layernorm_f32(r1, f(g2).reshape(1, C), f(b2).reshape(1, C))
    ffn = (jnp.maximum(ln2 @ f(w1) + f(fb1).reshape(1, 4 * C), 0.0)
           @ f(w2) + f(fb2).reshape(1, C))
    return r1 + ffn


if __name__ == "__main__":
    num_heads = 4
    head_size = nEmbd // num_heads          # 16; concat width = nEmbd = 64

    B, T, C = 2, 8, nEmbd                   # T <= blockSize (= 32)

    key = jax.random.PRNGKey(0)
    ks = jax.random.split(key, 10)

    bound_c = 1.0 / (C ** 0.5)
    bound_4c = 1.0 / ((4 * C) ** 0.5)
    u = lambda k, shape, bnd: jax.random.uniform(k, shape, jnp.float32, -bnd, bnd)

    x = jax.random.normal(ks[0], (B, T, C), dtype=jnp.float32)
    wq = u(ks[1], (C, C), bound_c)
    wk = u(ks[2], (C, C), bound_c)
    wv = u(ks[3], (C, C), bound_c)
    wp = u(ks[4], (C, C), bound_c)
    bp = u(ks[5], (C,), bound_c)
    w1 = u(ks[6], (C, 4 * C), bound_c)
    fb1 = u(ks[7], (4 * C,), bound_c)
    w2 = u(ks[8], (4 * C, C), bound_4c)
    fb2 = u(ks[9], (C,), bound_4c)
    g1 = jnp.ones((C,), jnp.float32)
    b1 = jnp.zeros((C,), jnp.float32)
    g2 = jnp.ones((C,), jnp.float32)
    b2 = jnp.zeros((C,), jnp.float32)

    # Cast x / weight matrices to bf16 up front; both the kernel and the f32
    # reference consume the SAME bf16 arrays, so the comparison isolates
    # kernel error (bf16 intermediates, approx reciprocal) from the input
    # quantization error.
    x = x.astype(jnp.bfloat16)
    wq, wk, wv, wp = [a.astype(jnp.bfloat16) for a in (wq, wk, wv, wp)]
    w1 = w1.astype(jnp.bfloat16)
    w2 = w2.astype(jnp.bfloat16)

    args = (x, g1, b1, wq, wk, wv, wp, bp, g2, b2, w1, fb1, w2, fb2)

    out = block_forward(*args, num_heads=num_heads, head_size=head_size)
    out = jax.block_until_ready(out)

    ref = reference(*args, num_heads=num_heads, head_size=head_size)
    assert out.shape == (B, T, C)
    assert jnp.allclose(out, ref, atol=2e-2, rtol=2e-2), "mismatch vs reference"

    print("KERNEL_OK")
</pallas_src>

<mosaic_0001>
module attributes {stable_mosaic.version = 11 : i64} {
  func.func @block_kernel(%arg0: i32, %arg1: memref<16x64xbf16, #tpu.memory_space<vmem>>, %arg2: memref<8x64xf32, #tpu.memory_space<vmem>>, %arg3: memref<1x256xf32, #tpu.memory_space<vmem>>, %arg4: memref<64x192xbf16, #tpu.memory_space<vmem>>, %arg5: memref<64x64xbf16, #tpu.memory_space<vmem>>, %arg6: memref<64x256xbf16, #tpu.memory_space<vmem>>, %arg7: memref<256x64xbf16, #tpu.memory_space<vmem>>, %arg8: memref<16x64xf32, #tpu.memory_space<vmem>>) attributes {dimension_semantics = [#tpu.dimension_semantics<arbitrary>], iteration_bounds = array<i64: 1>, scalar_prefetch = 0 : i64, scratch_operands = 0 : i64, tpu.core_type = #tpu.core_type<tc>, window_params = [{pipeline_mode = #tpu.pipeline_mode<synchronous>, transform_indices = @transform_0, window_bounds = array<i64: 16, 64>}, {pipeline_mode = #tpu.pipeline_mode<synchronous>, transform_indices = @transform_1, window_bounds = array<i64: 8, 64>}, {pipeline_mode = #tpu.pipeline_mode<synchronous>, transform_indices = @transform_2, window_bounds = array<i64: 1, 256>}, {pipeline_mode = #tpu.pipeline_mode<synchronous>, transform_indices = @transform_3, window_bounds = array<i64: 64, 192>}, {pipeline_mode = #tpu.pipeline_mode<synchronous>, transform_indices = @transform_4, window_bounds = array<i64: 64, 64>}, {pipeline_mode = #tpu.pipeline_mode<synchronous>, transform_indices = @transform_5, window_bounds = array<i64: 64, 256>}, {pipeline_mode = #tpu.pipeline_mode<synchronous>, transform_indices = @transform_6, window_bounds = array<i64: 256, 64>}, {pipeline_mode = #tpu.pipeline_mode<synchronous>, transform_indices = @transform_7, window_bounds = array<i64: 16, 64>}]} {
    %c0 = arith.constant 0 : index
    %c0_0 = arith.constant 0 : index
    %0 = vector.load %arg2[%c0, %c0_0] : memref<8x64xf32, #tpu.memory_space<vmem>>, vector<8x64xf32>
    %1 = vector.extract_strided_slice %0 {offsets = [0, 0], sizes = [1, 64], strides = [1, 1]} : vector<8x64xf32> to vector<1x64xf32>
    %2 = vector.extract_strided_slice %0 {offsets = [1, 0], sizes = [1, 64], strides = [1, 1]} : vector<8x64xf32> to vector<1x64xf32>
    %3 = vector.extract_strided_slice %0 {offsets = [2, 0], sizes = [1, 64], strides = [1, 1]} : vector<8x64xf32> to vector<1x64xf32>
    %4 = vector.extract_strided_slice %0 {offsets = [3, 0], sizes = [1, 64], strides = [1, 1]} : vector<8x64xf32> to vector<1x64xf32>
    %5 = vector.extract_strided_slice %0 {offsets = [4, 0], sizes = [1, 64], strides = [1, 1]} : vector<8x64xf32> to vector<1x64xf32>
    %6 = vector.extract_strided_slice %0 {offsets = [5, 0], sizes = [1, 64], strides = [1, 1]} : vector<8x64xf32> to vector<1x64xf32>
    %c0_1 = arith.constant 0 : index
    %c0_2 = arith.constant 0 : index
    %7 = vector.load %arg3[%c0_1, %c0_2] : memref<1x256xf32, #tpu.memory_space<vmem>>, vector<1x256xf32>
    %c0_3 = arith.constant 0 : index
    %c0_4 = arith.constant 0 : index
    %8 = vector.load %arg4[%c0_3, %c0_4] : memref<64x192xbf16, #tpu.memory_space<vmem>>, vector<64x192xbf16>
    %c0_5 = arith.constant 0 : index
    %c0_6 = arith.constant 0 : index
    %9 = vector.load %arg5[%c0_5, %c0_6] : memref<64x64xbf16, #tpu.memory_space<vmem>>, vector<64x64xbf16>
    %c0_7 = arith.constant 0 : index
    %c0_8 = arith.constant 0 : index
    %10 = vector.load %arg6[%c0_7, %c0_8] : memref<64x256xbf16, #tpu.memory_space<vmem>>, vector<64x256xbf16>
    %c0_9 = arith.constant 0 : index
    %c0_10 = arith.constant 0 : index
    %11 = vector.load %arg7[%c0_9, %c0_10] : memref<256x64xbf16, #tpu.memory_space<vmem>>, vector<256x64xbf16>
    %c0_11 = arith.constant 0 : index
    %c0_12 = arith.constant 0 : index
    %12 = vector.load %arg1[%c0_11, %c0_12] : memref<16x64xbf16, #tpu.memory_space<vmem>>, vector<16x64xbf16>
    %13 = arith.extf %12 : vector<16x64xbf16> to vector<16x64xf32>
    %cst = arith.constant dense<0.000000e+00> : vector<16xf32>
    %14 = vector.multi_reduction <add>, %13, %cst [1] : vector<16x64xf32> to vector<16xf32>
    %15 = vector.shape_cast %14 : vector<16xf32> to vector<16x1xf32>
    %cst_13 = arith.constant 6.400000e+01 : f32
    %16 = vector.broadcast %cst_13 : f32 to vector<16x1xf32>
    %17 = arith.divf %15, %16 : vector<16x1xf32>
    %18 = vector.broadcast %17 : vector<16x1xf32> to vector<16x64xf32>
    %19 = arith.subf %13, %18 : vector<16x64xf32>
    %20 = arith.mulf %19, %19 : vector<16x64xf32>
    %cst_14 = arith.constant dense<0.000000e+00> : vector<16xf32>
    %21 = vector.multi_reduction <add>, %20, %cst_14 [1] : vector<16x64xf32> to vector<16xf32>
    %22 = vector.shape_cast %21 : vector<16xf32> to vector<16x1xf32>
    %cst_15 = arith.constant 6.400000e+01 : f32
    %23 = vector.broadcast %cst_15 : f32 to vector<16x1xf32>
    %24 = arith.divf %22, %23 : vector<16x1xf32>
    %cst_16 = arith.constant 9.99999974E-6 : f32
    %25 = vector.broadcast %cst_16 : f32 to vector<16x1xf32>
    %26 = arith.addf %24, %25 : vector<16x1xf32>
    %27 = math.rsqrt %26 : vector<16x1xf32>
    %28 = vector.broadcast %27 : vector<16x1xf32> to vector<16x64xf32>
    %29 = arith.mulf %19, %28 : vector<16x64xf32>
    %30 = vector.broadcast %1 : vector<1x64xf32> to vector<16x64xf32>
    %31 = arith.mulf %29, %30 : vector<16x64xf32>
    %32 = vector.broadcast %2 : vector<1x64xf32> to vector<16x64xf32>
    %33 = arith.addf %31, %32 : vector<16x64xf32>
    %34 = arith.truncf %33 : vector<16x64xf32> to vector<16x64xbf16>
    %cst_17 = arith.constant dense<0.000000e+00> : vector<16x192xf32>
    %35 = tpu.matmul %34, %8, %cst_17 {dimension_numbers = #tpu.dot_dimension_numbers<[1], [0], [0], [1], [0, 0, 1, 1], [], []>} : vector<16x64xbf16>, vector<64x192xbf16>, vector<16x192xf32> -> vector<16x192xf32>
    %36 = arith.truncf %35 : vector<16x192xf32> to vector<16x192xbf16>
    %37 = tpu.iota {dimensions = array<i32: 0>} : vector<8x8xi32>
    %38 = tpu.iota {dimensions = array<i32: 1>} : vector<8x8xi32>
    %39 = arith.cmpi sge, %37, %38 : vector<8x8xi32>
    %40 = vector.shape_cast %39 : vector<8x8xi1> to vector<1x8x8xi1>
    %cst_18 = arith.constant 0.000000e+00 : f32
    %41 = vector.broadcast %cst_18 : f32 to vector<16x64xf32>
    %42 = vector.extract_strided_slice %36 {offsets = [0, 0], sizes = [16, 16], strides = [1, 1]} : vector<16x192xbf16> to vector<16x16xbf16>
    %43 = vector.shape_cast %42 : vector<16x16xbf16> to vector<2x8x16xbf16>
    %44 = vector.extract_strided_slice %36 {offsets = [0, 64], sizes = [16, 16], strides = [1, 1]} : vector<16x192xbf16> to vector<16x16xbf16>
    %45 = vector.shape_cast %44 : vector<16x16xbf16> to vector<2x8x16xbf16>
    %46 = vector.extract_strided_slice %36 {offsets = [0, 128], sizes = [16, 16], strides = [1, 1]} : vector<16x192xbf16> to vector<16x16xbf16>
    %47 = vector.shape_cast %46 : vector<16x16xbf16> to vector<2x8x16xbf16>
    "tpu.trace_start"() <{level = 10 : i32, message = "bqd,bkd->bqk"}> : () -> ()
    %cst_19 = arith.constant dense<0.000000e+00> : vector<2x8x8xf32>
    %48 = tpu.matmul %43, %45, %cst_19 {dimension_numbers = #tpu.dot_dimension_numbers<[2], [2], [1], [1], [0, 0, 0, 1, 1, 1], [0], [0]>} : vector<2x8x16xbf16>, vector<2x8x16xbf16>, vector<2x8x8xf32> -> vector<2x8x8xf32>
    %cst_20 = arith.constant -1.000000e+30 : f32
    "tpu.trace_stop"() : () -> ()
    %49 = vector.shape_cast %40 : vector<1x8x8xi1> to vector<1x8x8xi1>
    %50 = vector.broadcast %49 : vector<1x8x8xi1> to vector<2x8x8xi1>
    %51 = vector.broadcast %cst_20 : f32 to vector<2x8x8xf32>
    %52 = arith.select %50, %48, %51 : vector<2x8x8xi1>, vector<2x8x8xf32>
    %cst_21 = arith.constant dense<0xFF800000> : vector<2x8xf32>
    %53 = vector.multi_reduction <maximumf>, %52, %cst_21 [2] : vector<2x8x8xf32> to vector<2x8xf32>
    %54 = vector.shape_cast %53 : vector<2x8xf32> to vector<2x8x1xf32>
    %55 = vector.broadcast %54 : vector<2x8x1xf32> to vector<2x8x8xf32>
    %56 = arith.subf %52, %55 : vector<2x8x8xf32>
    %57 = math.exp %56 : vector<2x8x8xf32>
    %cst_22 = arith.constant dense<0.000000e+00> : vector<2x8xf32>
    %58 = vector.multi_reduction <add>, %57, %cst_22 [2] : vector<2x8x8xf32> to vector<2x8xf32>
    %59 = vector.shape_cast %58 : vector<2x8xf32> to vector<2x8x1xf32>
    %60 = tpu.reciprocal %59 {approx = true} : vector<2x8x1xf32> -> vector<2x8x1xf32>
    %61 = vector.broadcast %60 : vector<2x8x1xf32> to vector<2x8x8xf32>
    %62 = arith.mulf %57, %61 : vector<2x8x8xf32>
    %63 = arith.truncf %62 : vector<2x8x8xf32> to vector<2x8x8xbf16>
    "tpu.trace_start"() <{level = 10 : i32, message = "bqk,bkd->bqd"}> : () -> ()
    %cst_23 = arith.constant dense<0.000000e+00> : vector<2x8x16xf32>
    %64 = tpu.matmul %63, %47, %cst_23 {dimension_numbers = #tpu.dot_dimension_numbers<[2], [1], [1], [2], [0, 0, 0, 1, 1, 2], [0], [0]>} : vector<2x8x8xbf16>, vector<2x8x16xbf16>, vector<2x8x16xf32> -> vector<2x8x16xf32>
    "tpu.trace_stop"() : () -> ()
    %65 = vector.shape_cast %64 : vector<2x8x16xf32> to vector<16x16xf32>
    %66 = arith.truncf %65 : vector<16x16xf32> to vector<16x16xbf16>
    %67 = vector.extract_strided_slice %9 {offsets = [0, 0], sizes = [16, 64], strides = [1, 1]} : vector<64x64xbf16> to vector<16x64xbf16>
    %cst_24 = arith.constant dense<0.000000e+00> : vector<16x64xf32>
    %68 = tpu.matmul %66, %67, %cst_24 {dimension_numbers = #tpu.dot_dimension_numbers<[1], [0], [0], [1], [0, 0, 1, 1], [], []>} : vector<16x16xbf16>, vector<16x64xbf16>, vector<16x64xf32> -> vector<16x64xf32>
    %69 = arith.addf %41, %68 : vector<16x64xf32>
    %70 = vector.extract_strided_slice %36 {offsets = [0, 16], sizes = [16, 16], strides = [1, 1]} : vector<16x192xbf16> to vector<16x16xbf16>
    %71 = vector.shape_cast %70 : vector<16x16xbf16> to vector<2x8x16xbf16>
    %72 = vector.extract_strided_slice %36 {offsets = [0, 80], sizes = [16, 16], strides = [1, 1]} : vector<16x192xbf16> to vector<16x16xbf16>
    %73 = vector.shape_cast %72 : vector<16x16xbf16> to vector<2x8x16xbf16>
    %74 = vector.extract_strided_slice %36 {offsets = [0, 144], sizes = [16, 16], strides = [1, 1]} : vector<16x192xbf16> to vector<16x16xbf16>
    %75 = vector.shape_cast %74 : vector<16x16xbf16> to vector<2x8x16xbf16>
    "tpu.trace_start"() <{level = 10 : i32, message = "bqd,bkd->bqk"}> : () -> ()
    %cst_25 = arith.constant dense<0.000000e+00> : vector<2x8x8xf32>
    %76 = tpu.matmul %71, %73, %cst_25 {dimension_numbers = #tpu.dot_dimension_numbers<[2], [2], [1], [1], [0, 0, 0, 1, 1, 1], [0], [0]>} : vector<2x8x16xbf16>, vector<2x8x16xbf16>, vector<2x8x8xf32> -> vector<2x8x8xf32>
    %cst_26 = arith.constant -1.000000e+30 : f32
    "tpu.trace_stop"() : () -> ()
    %77 = vector.shape_cast %40 : vector<1x8x8xi1> to vector<1x8x8xi1>
    %78 = vector.broadcast %77 : vector<1x8x8xi1> to vector<2x8x8xi1>
    %79 = vector.broadcast %cst_26 : f32 to vector<2x8x8xf32>
    %80 = arith.select %78, %76, %79 : vector<2x8x8xi1>, vector<2x8x8xf32>
    %cst_27 = arith.constant dense<0xFF800000> : vector<2x8xf32>
    %81 = vector.multi_reduction <maximumf>, %80, %cst_27 [2] : vector<2x8x8xf32> to vector<2x8xf32>
    %82 = vector.shape_cast %81 : vector<2x8xf32> to vector<2x8x1xf32>
    %83 = vector.broadcast %82 : vector<2x8x1xf32> to vector<2x8x8xf32>
    %84 = arith.subf %80, %83 : vector<2x8x8xf32>
    %85 = math.exp %84 : vector<2x8x8xf32>
    %cst_28 = arith.constant dense<0.000000e+00> : vector<2x8xf32>
    %86 = vector.multi_reduction <add>, %85, %cst_28 [2] : vector<2x8x8xf32> to vector<2x8xf32>
    %87 = vector.shape_cast %86 : vector<2x8xf32> to vector<2x8x1xf32>
    %88 = tpu.reciprocal %87 {approx = true} : vector<2x8x1xf32> -> vector<2x8x1xf32>
    %89 = vector.broadcast %88 : vector<2x8x1xf32> to vector<2x8x8xf32>
    %90 = arith.mulf %85, %89 : vector<2x8x8xf32>
    %91 = arith.truncf %90 : vector<2x8x8xf32> to vector<2x8x8xbf16>
    "tpu.trace_start"() <{level = 10 : i32, message = "bqk,bkd->bqd"}> : () -> ()
    %cst_29 = arith.constant dense<0.000000e+00> : vector<2x8x16xf32>
    %92 = tpu.matmul %91, %75, %cst_29 {dimension_numbers = #tpu.dot_dimension_numbers<[2], [1], [1], [2], [0, 0, 0, 1, 1, 2], [0], [0]>} : vector<2x8x8xbf16>, vector<2x8x16xbf16>, vector<2x8x16xf32> -> vector<2x8x16xf32>
    "tpu.trace_stop"() : () -> ()
    %93 = vector.shape_cast %92 : vector<2x8x16xf32> to vector<16x16xf32>
    %94 = arith.truncf %93 : vector<16x16xf32> to vector<16x16xbf16>
    %95 = vector.extract_strided_slice %9 {offsets = [16, 0], sizes = [16, 64], strides = [1, 1]} : vector<64x64xbf16> to vector<16x64xbf16>
    %cst_30 = arith.constant dense<0.000000e+00> : vector<16x64xf32>
    %96 = tpu.matmul %94, %95, %cst_30 {dimension_numbers = #tpu.dot_dimension_numbers<[1], [0], [0], [1], [0, 0, 1, 1], [], []>} : vector<16x16xbf16>, vector<16x64xbf16>, vector<16x64xf32> -> vector<16x64xf32>
    %97 = arith.addf %69, %96 : vector<16x64xf32>
    %98 = vector.extract_strided_slice %36 {offsets = [0, 32], sizes = [16, 16], strides = [1, 1]} : vector<16x192xbf16> to vector<16x16xbf16>
    %99 = vector.shape_cast %98 : vector<16x16xbf16> to vector<2x8x16xbf16>
    %100 = vector.extract_strided_slice %36 {offsets = [0, 96], sizes = [16, 16], strides = [1, 1]} : vector<16x192xbf16> to vector<16x16xbf16>
    %101 = vector.shape_cast %100 : vector<16x16xbf16> to vector<2x8x16xbf16>
    %102 = vector.extract_strided_slice %36 {offsets = [0, 160], sizes = [16, 16], strides = [1, 1]} : vector<16x192xbf16> to vector<16x16xbf16>
    %103 = vector.shape_cast %102 : vector<16x16xbf16> to vector<2x8x16xbf16>
    "tpu.trace_start"() <{level = 10 : i32, message = "bqd,bkd->bqk"}> : () -> ()
    %cst_31 = arith.constant dense<0.000000e+00> : vector<2x8x8xf32>
    %104 = tpu.matmul %99, %101, %cst_31 {dimension_numbers = #tpu.dot_dimension_numbers<[2], [2], [1], [1], [0, 0, 0, 1, 1, 1], [0], [0]>} : vector<2x8x16xbf16>, vector<2x8x16xbf16>, vector<2x8x8xf32> -> vector<2x8x8xf32>
    %cst_32 = arith.constant -1.000000e+30 : f32
    "tpu.trace_stop"() : () -> ()
    %105 = vector.shape_cast %40 : vector<1x8x8xi1> to vector<1x8x8xi1>
    %106 = vector.broadcast %105 : vector<1x8x8xi1> to vector<2x8x8xi1>
    %107 = vector.broadcast %cst_32 : f32 to vector<2x8x8xf32>
    %108 = arith.select %106, %104, %107 : vector<2x8x8xi1>, vector<2x8x8xf32>
    %cst_33 = arith.constant dense<0xFF800000> : vector<2x8xf32>
    %109 = vector.multi_reduction <maximumf>, %108, %cst_33 [2] : vector<2x8x8xf32> to vector<2x8xf32>
    %110 = vector.shape_cast %109 : vector<2x8xf32> to vector<2x8x1xf32>
    %111 = vector.broadcast %110 : vector<2x8x1xf32> to vector<2x8x8xf32>
    %112 = arith.subf %108, %111 : vector<2x8x8xf32>
    %113 = math.exp %112 : vector<2x8x8xf32>
    %cst_34 = arith.constant dense<0.000000e+00> : vector<2x8xf32>
    %114 = vector.multi_reduction <add>, %113, %cst_34 [2] : vector<2x8x8xf32> to vector<2x8xf32>
    %115 = vector.shape_cast %114 : vector<2x8xf32> to vector<2x8x1xf32>
    %116 = tpu.reciprocal %115 {approx = true} : vector<2x8x1xf32> -> vector<2x8x1xf32>
    %117 = vector.broadcast %116 : vector<2x8x1xf32> to vector<2x8x8xf32>
    %118 = arith.mulf %113, %117 : vector<2x8x8xf32>
    %119 = arith.truncf %118 : vector<2x8x8xf32> to vector<2x8x8xbf16>
    "tpu.trace_start"() <{level = 10 : i32, message = "bqk,bkd->bqd"}> : () -> ()
    %cst_35 = arith.constant dense<0.000000e+00> : vector<2x8x16xf32>
    %120 = tpu.matmul %119, %103, %cst_35 {dimension_numbers = #tpu.dot_dimension_numbers<[2], [1], [1], [2], [0, 0, 0, 1, 1, 2], [0], [0]>} : vector<2x8x8xbf16>, vector<2x8x16xbf16>, vector<2x8x16xf32> -> vector<2x8x16xf32>
    "tpu.trace_stop"() : () -> ()
    %121 = vector.shape_cast %120 : vector<2x8x16xf32> to vector<16x16xf32>
    %122 = arith.truncf %121 : vector<16x16xf32> to vector<16x16xbf16>
    %123 = vector.extract_strided_slice %9 {offsets = [32, 0], sizes = [16, 64], strides = [1, 1]} : vector<64x64xbf16> to vector<16x64xbf16>
    %cst_36 = arith.constant dense<0.000000e+00> : vector<16x64xf32>
    %124 = tpu.matmul %122, %123, %cst_36 {dimension_numbers = #tpu.dot_dimension_numbers<[1], [0], [0], [1], [0, 0, 1, 1], [], []>} : vector<16x16xbf16>, vector<16x64xbf16>, vector<16x64xf32> -> vector<16x64xf32>
    %125 = arith.addf %97, %124 : vector<16x64xf32>
    %126 = vector.extract_strided_slice %36 {offsets = [0, 48], sizes = [16, 16], strides = [1, 1]} : vector<16x192xbf16> to vector<16x16xbf16>
    %127 = vector.shape_cast %126 : vector<16x16xbf16> to vector<2x8x16xbf16>
    %128 = vector.extract_strided_slice %36 {offsets = [0, 112], sizes = [16, 16], strides = [1, 1]} : vector<16x192xbf16> to vector<16x16xbf16>
    %129 = vector.shape_cast %128 : vector<16x16xbf16> to vector<2x8x16xbf16>
    %130 = vector.extract_strided_slice %36 {offsets = [0, 176], sizes = [16, 16], strides = [1, 1]} : vector<16x192xbf16> to vector<16x16xbf16>
    %131 = vector.shape_cast %130 : vector<16x16xbf16> to vector<2x8x16xbf16>
    "tpu.trace_start"() <{level = 10 : i32, message = "bqd,bkd->bqk"}> : () -> ()
    %cst_37 = arith.constant dense<0.000000e+00> : vector<2x8x8xf32>
    %132 = tpu.matmul %127, %129, %cst_37 {dimension_numbers = #tpu.dot_dimension_numbers<[2], [2], [1], [1], [0, 0, 0, 1, 1, 1], [0], [0]>} : vector<2x8x16xbf16>, vector<2x8x16xbf16>, vector<2x8x8xf32> -> vector<2x8x8xf32>
    %cst_38 = arith.constant -1.000000e+30 : f32
    "tpu.trace_stop"() : () -> ()
    %133 = vector.shape_cast %40 : vector<1x8x8xi1> to vector<1x8x8xi1>
    %134 = vector.broadcast %133 : vector<1x8x8xi1> to vector<2x8x8xi1>
    %135 = vector.broadcast %cst_38 : f32 to vector<2x8x8xf32>
    %136 = arith.select %134, %132, %135 : vector<2x8x8xi1>, vector<2x8x8xf32>
    %cst_39 = arith.constant dense<0xFF800000> : vector<2x8xf32>
    %137 = vector.multi_reduction <maximumf>, %136, %cst_39 [2] : vector<2x8x8xf32> to vector<2x8xf32>
    %138 = vector.shape_cast %137 : vector<2x8xf32> to vector<2x8x1xf32>
    %139 = vector.broadcast %138 : vector<2x8x1xf32> to vector<2x8x8xf32>
    %140 = arith.subf %136, %139 : vector<2x8x8xf32>
    %141 = math.exp %140 : vector<2x8x8xf32>
    %cst_40 = arith.constant dense<0.000000e+00> : vector<2x8xf32>
    %142 = vector.multi_reduction <add>, %141, %cst_40 [2] : vector<2x8x8xf32> to vector<2x8xf32>
    %143 = vector.shape_cast %142 : vector<2x8xf32> to vector<2x8x1xf32>
    %144 = tpu.reciprocal %143 {approx = true} : vector<2x8x1xf32> -> vector<2x8x1xf32>
    %145 = vector.broadcast %144 : vector<2x8x1xf32> to vector<2x8x8xf32>
    %146 = arith.mulf %141, %145 : vector<2x8x8xf32>
    %147 = arith.truncf %146 : vector<2x8x8xf32> to vector<2x8x8xbf16>
    "tpu.trace_start"() <{level = 10 : i32, message = "bqk,bkd->bqd"}> : () -> ()
    %cst_41 = arith.constant dense<0.000000e+00> : vector<2x8x16xf32>
    %148 = tpu.matmul %147, %131, %cst_41 {dimension_numbers = #tpu.dot_dimension_numbers<[2], [1], [1], [2], [0, 0, 0, 1, 1, 2], [0], [0]>} : vector<2x8x8xbf16>, vector<2x8x16xbf16>, vector<2x8x16xf32> -> vector<2x8x16xf32>
    "tpu.trace_stop"() : () -> ()
    %149 = vector.shape_cast %148 : vector<2x8x16xf32> to vector<16x16xf32>
    %150 = arith.truncf %149 : vector<16x16xf32> to vector<16x16xbf16>
    %151 = vector.extract_strided_slice %9 {offsets = [48, 0], sizes = [16, 64], strides = [1, 1]} : vector<64x64xbf16> to vector<16x64xbf16>
    %cst_42 = arith.constant dense<0.000000e+00> : vector<16x64xf32>
    %152 = tpu.matmul %150, %151, %cst_42 {dimension_numbers = #tpu.dot_dimension_numbers<[1], [0], [0], [1], [0, 0, 1, 1], [], []>} : vector<16x16xbf16>, vector<16x64xbf16>, vector<16x64xf32> -> vector<16x64xf32>
    %153 = arith.addf %125, %152 : vector<16x64xf32>
    %154 = vector.broadcast %5 : vector<1x64xf32> to vector<16x64xf32>
    %155 = arith.addf %153, %154 : vector<16x64xf32>
    %156 = arith.addf %13, %155 : vector<16x64xf32>
    %cst_43 = arith.constant dense<0.000000e+00> : vector<16xf32>
    %157 = vector.multi_reduction <add>, %156, %cst_43 [1] : vector<16x64xf32> to vector<16xf32>
    %158 = vector.shape_cast %157 : vector<16xf32> to vector<16x1xf32>
    %cst_44 = arith.constant 6.400000e+01 : f32
    %159 = vector.broadcast %cst_44 : f32 to vector<16x1xf32>
    %160 = arith.divf %158, %159 : vector<16x1xf32>
    %161 = vector.broadcast %160 : vector<16x1xf32> to vector<16x64xf32>
    %162 = arith.subf %156, %161 : vector<16x64xf32>
    %163 = arith.mulf %162, %162 : vector<16x64xf32>
    %cst_45 = arith.constant dense<0.000000e+00> : vector<16xf32>
    %164 = vector.multi_reduction <add>, %163, %cst_45 [1] : vector<16x64xf32> to vector<16xf32>
    %165 = vector.shape_cast %164 : vector<16xf32> to vector<16x1xf32>
    %cst_46 = arith.constant 6.400000e+01 : f32
    %166 = vector.broadcast %cst_46 : f32 to vector<16x1xf32>
    %167 = arith.divf %165, %166 : vector<16x1xf32>
    %cst_47 = arith.constant 9.99999974E-6 : f32
    %168 = vector.broadcast %cst_47 : f32 to vector<16x1xf32>
    %169 = arith.addf %167, %168 : vector<16x1xf32>
    %170 = math.rsqrt %169 : vector<16x1xf32>
    %171 = vector.broadcast %170 : vector<16x1xf32> to vector<16x64xf32>
    %172 = arith.mulf %162, %171 : vector<16x64xf32>
    %173 = vector.broadcast %3 : vector<1x64xf32> to vector<16x64xf32>
    %174 = arith.mulf %172, %173 : vector<16x64xf32>
    %175 = vector.broadcast %4 : vector<1x64xf32> to vector<16x64xf32>
    %176 = arith.addf %174, %175 : vector<16x64xf32>
    %177 = arith.truncf %176 : vector<16x64xf32> to vector<16x64xbf16>
    %cst_48 = arith.constant dense<0.000000e+00> : vector<16x256xf32>
    %178 = tpu.matmul %177, %10, %cst_48 {dimension_numbers = #tpu.dot_dimension_numbers<[1], [0], [0], [1], [0, 0, 1, 1], [], []>} : vector<16x64xbf16>, vector<64x256xbf16>, vector<16x256xf32> -> vector<16x256xf32>
    %179 = vector.broadcast %7 : vector<1x256xf32> to vector<16x256xf32>
    %180 = arith.addf %178, %179 : vector<16x256xf32>
    %cst_49 = arith.constant 0.000000e+00 : f32
    %181 = vector.broadcast %cst_49 : f32 to vector<16x256xf32>
    %182 = arith.maximumf %180, %181 : vector<16x256xf32>
    %183 = arith.truncf %182 : vector<16x256xf32> to vector<16x256xbf16>
    %cst_50 = arith.constant dense<0.000000e+00> : vector<16x64xf32>
    %184 = tpu.matmul %183, %11, %cst_50 {dimension_numbers = #tpu.dot_dimension_numbers<[1], [0], [0], [1], [0, 0, 1, 1], [], []>} : vector<16x256xbf16>, vector<256x64xbf16>, vector<16x64xf32> -> vector<16x64xf32>
    %185 = vector.broadcast %6 : vector<1x64xf32> to vector<16x64xf32>
    %186 = arith.addf %184, %185 : vector<16x64xf32>
    %187 = arith.addf %156, %186 : vector<16x64xf32>
    %c0_51 = arith.constant 0 : index
    %c0_52 = arith.constant 0 : index
    %188 = vector.load %arg8[%c0_51, %c0_52] : memref<16x64xf32, #tpu.memory_space<vmem>>, vector<16x64xf32>
    tpu.vector_store %arg8[%c0_51, %c0_52], %187 {strides = array<i32>} : memref<16x64xf32, #tpu.memory_space<vmem>>, vector<16x64xf32>,
    return
  }
  func.func @transform_0(%arg0: i32) -> (i32, i32) {
    %c0_i32 = arith.constant 0 : i32
    %c0_i32_0 = arith.constant 0 : i32
    %c0_i32_1 = arith.constant 0 : i32
    return %c0_i32, %c0_i32_0 : i32, i32
  }
  func.func @transform_1(%arg0: i32) -> (i32, i32) {
    %c0_i32 = arith.constant 0 : i32
    %c0_i32_0 = arith.constant 0 : i32
    %c0_i32_1 = arith.constant 0 : i32
    return %c0_i32, %c0_i32_0 : i32, i32
  }
  func.func @transform_2(%arg0: i32) -> (i32, i32) {
    %c0_i32 = arith.constant 0 : i32
    %c0_i32_0 = arith.constant 0 : i32
    %c0_i32_1 = arith.constant 0 : i32
    return %c0_i32, %c0_i32_0 : i32, i32
  }
  func.func @transform_3(%arg0: i32) -> (i32, i32) {
    %c0_i32 = arith.constant 0 : i32
    %c0_i32_0 = arith.constant 0 : i32
    %c0_i32_1 = arith.constant 0 : i32
    return %c0_i32, %c0_i32_0 : i32, i32
  }
  func.func @transform_4(%arg0: i32) -> (i32, i32) {
    %c0_i32 = arith.constant 0 : i32
    %c0_i32_0 = arith.constant 0 : i32
    %c0_i32_1 = arith.constant 0 : i32
    return %c0_i32, %c0_i32_0 : i32, i32
  }
  func.func @transform_5(%arg0: i32) -> (i32, i32) {
    %c0_i32 = arith.constant 0 : i32
    %c0_i32_0 = arith.constant 0 : i32
    %c0_i32_1 = arith.constant 0 : i32
    return %c0_i32, %c0_i32_0 : i32, i32
  }
  func.func @transform_6(%arg0: i32) -> (i32, i32) {
    %c0_i32 = arith.constant 0 : i32
    %c0_i32_0 = arith.constant 0 : i32
    %c0_i32_1 = arith.constant 0 : i32
    return %c0_i32, %c0_i32_0 : i32, i32
  }
  func.func @transform_7(%arg0: i32) -> (i32, i32) {
    %c0_i32 = arith.constant 0 : i32
    %c0_i32_0 = arith.constant 0 : i32
    %c0_i32_1 = arith.constant 0 : i32
    return %c0_i32, %c0_i32_0 : i32, i32
  }
}

</mosaic_0001>

<bundles_post_ra>
// kernel: tpu_custom_call.1
= control target key start
LH: loop header
LB: loop body
LE: loop exit
PB: predicated region body
PF: predicated region fallthrough
CT: control target
= control target key end

     0   :  { %vm90_vm0 = vcmask 523264   ;;  %s2443_s0 = inlined_call_operand.vmem [shape: bf16[16,64], index: 0, kind: input, shape index: {}]   ;;  %s2444_s1 = inlined_call_operand.vmem [shape: f32[8,64], index: 1, kind: input, shape index: {}]   ;;  %s2445_s2 = inlined_call_operand.vmem [shape: f32[1,256], index: 2, kind: input, shape index: {}]   ;;  %s2446_s3 = inlined_call_operand.vmem [shape: bf16[64,192], index: 3, kind: input, shape index: {}]   ;;  %s2447_s4 = inlined_call_operand.vmem [shape: bf16[64,64], index: 4, kind: input, shape index: {}]   ;;  %s2448_s5 = inlined_call_operand.vmem [shape: bf16[64,256], index: 5, kind: input, shape index: {}]   ;;  %s2449_s6 = inlined_call_operand.vmem [shape: bf16[256,64], index: 6, kind: input, shape index: {}]   ;;  %s2450_s7 = inlined_call_operand.hbm [shape: f32[16,64], index: 7, kind: output, shape index: {}]  }
   0x1   :  { %v1705_v0 = vld [vmem:[%s2443_s0] sm:$0xff]  }
   0x2   :  { %v2067_v1 = vunpack.c.l.bf16 %v1705_v0  ;;  %v2069_v2 = vunpack.c.h.bf16 %v1705_v0 }
   0x4   :  { %v91_v3 = vsel %vm90_vm0, %v2067_v1, 0.0  ;;  %v94_v4 = vsel %vm90_vm0, %v2069_v2, 0.0 }
   0x5   :  { %92 = vadd.xlane.f32.xlu0 %v91_v3 }
   0x9   :  { %95 = vadd.xlane.f32.xlu0 %v94_v4 }
   0xa   :  { %12 = vsyncpa [#allocation3], 0  ;;  %v1903_v15 = vld [vmem:[%s2446_s3 + $0x4] ss:$8 sps:$4 sm:$0xff]   ;;  %v1905_v16 = vld [vmem:[%s2446_s3] ss:$8 sps:$4 sm:$0xff]   ;;  %v118_v28 = vlaneseq }
   0xb   :  { %174 = vmatprep.subr.bf16.mxu0 %v1903_v15  ;;  %v1906_v17 = vld [vmem:[%s2446_s3 + $0x14] ss:$8 sps:$4 sm:$0xff]   ;;  %v1908_v18 = vld [vmem:[%s2446_s3 + $0x10] ss:$8 sps:$4 sm:$0xff]   ;;  %v1909_v19 = vld [vmem:[%s2446_s3 + $0x24] ss:$8 sps:$4 sm:$0xff]  }
   0xc   :  { %175 = vmatpush1.bf16.msra.mxu0 %v1905_v16  ;;  %v1911_v20 = vld [vmem:[%s2446_s3 + $0x20] ss:$8 sps:$4 sm:$0xff]   ;;  %v1912_v21 = vld [vmem:[%s2446_s3 + $0x34] ss:$8 sps:$4 sm:$0xff]   ;;  %v1914_v22 = vld [vmem:[%s2446_s3 + $0x30] ss:$8 sps:$4 sm:$0xff]  }
   0xd   :  { %176 = vmatprep.subr.bf16.mxu0 %v1906_v17  ;;  %v2011_v23 = vmov 0   ;;  %v2104_v31 = vshrl.u32 %v118_v28, 7  ;;  %v2110_v33 = vld [vmem:[%s2444_s1] sm:$0xff]  ;;  %v2012_v46 = vmov 0.0   ;;  %vm2013_vm1 = vmmov 0   ;;  %s2014_s1 = smov 64  }
   0xe   :  { %206 = vmatprep.mubr.bf16.mxu0 %v2011_v23  ;;  %1776 = vmatprep.subr.bf16.mxu1 %v2012_v46  ;;  %vm236_vm2 = vcmask 130048   ;;  %vm363_vm3 = vcmask 1043456   ;;  %v222_v61 = vand.u32 127, %v118_v28  ;;  %vm335_vm5 = vcmask 64512   ;;  %s2015_s19 = smov 48   ;;  %s2016_s20 = smov 112  }
   0xf   :  { %v120_v32 = vsub.s32 0, %v2104_v31  ;;  %v126_v37 = vsub.s32 1, %v2104_v31  ;;  %1778 = vmatprep.mubr.msk.bf16.mxu1 %vm2013_vm1, %v2012_v46  ;;  %s2017_s21 = smov 32   ;;  %s2018_s22 = smov 96  }
  0x10   :  { %177 = vmatpush1.bf16.msra.mxu0 %v1908_v18  ;;  %vm2155_vm4 = vcmp.ge.s32.totalorder %v2104_v31, %v222_v61  ;;  %s2019_s26 = smov 16   ;;  %s2020_s27 = smov 80  }
  0x11   :  { %178 = vmatprep.subr.bf16.mxu0 %v1909_v19  ;;  %v121_v36 = vrot.slane %v2110_v33, %v120_v32  ;;  %v127_v41 = vrot.slane %v2110_v33, %v126_v37 }
  0x14   :  { %179 = vmatpush1.bf16.msra.mxu0 %v1911_v20 }
  0x15   :  { %180 = vmatprep.subr.bf16.mxu0 %v1912_v21 }
  0x18   :  { %181 = vmatpush1.bf16.msra.mxu0 %v1914_v22 }
  0x19   :  { %1770 = vmatprep.subr.bf16.mxu0 %v2012_v46 }
  0x92   :  { %v93_v5 = vpop.xlane.xlu0 %92 }
  0x93   :  { %v98_v6 = vmul.f32 0.015625, %v93_v5 }
  0x95   :  { %v100_v7 = vsub.f32 %v2067_v1, %v98_v6 }
  0x96   :  { %v96_v8 = vpop.xlane.xlu0 %95 }
  0x97   :  { %v99_v9 = vmul.f32 0.015625, %v96_v8  ;;  %v102_v10 = vmul.f32 %v100_v7, %v100_v7 }
  0x99   :  { %v101_v11 = vsub.f32 %v2069_v2, %v99_v9  ;;  %v104_v12 = vsel %vm90_vm0, %v102_v10, 0.0 }
  0x9a   :  { %105 = vadd.xlane.f32.xlu1 %v104_v12 }
  0x9b   :  { %v103_v13 = vmul.f32 %v101_v11, %v101_v11 }
  0x9d   :  { %v107_v14 = vsel %vm90_vm0, %v103_v13, 0.0 }
  0x9e   :  { %108 = vadd.xlane.f32.xlu1 %v107_v14 }
 0x127   :  { %v106_v24 = vpop.xlane.xlu1 %105 }
 0x128   :  { %v110_v25 = vmul.f32 0.015625, %v106_v24 }
 0x12a   :  { %v112_v26 = vadd.f32 1e-05, %v110_v25 }
 0x12b   :  { %v109_v27 = vpop.xlane.xlu1 %108 }
 0x12c   :  { %1947 = vrsqrt.f32 %v112_v26  ;;  %v111_v29 = vmul.f32 0.015625, %v109_v27 }
 0x12e   :  { %v113_v30 = vadd.f32 1e-05, %v111_v29 }
 0x130   :  { %1949 = vrsqrt.f32 %v113_v30 }
 0x136   :  { %v1948_v34 = vpop.eup %1947 }
 0x137   :  { %v116_v35 = vmul.f32 %v1948_v34, %v100_v7 }
 0x139   :  { %v122_v40 = vmul.f32 %v121_v36, %v116_v35 }
 0x13a   :  { %v1950_v38 = vpop.eup %1949 }
 0x13b   :  { %v117_v39 = vmul.f32 %v1950_v38, %v101_v11  ;;  %v128_v43 = vadd.f32 %v127_v41, %v122_v40 }
 0x13d   :  { %v123_v42 = vmul.f32 %v121_v36, %v117_v39 }
 0x13f   :  { %v129_v44 = vadd.f32 %v127_v41, %v123_v42 }
 0x141   :  { %v130_v45 = vpack.c.bf16 %v129_v44, %v128_v43 }
 0x143   :  { %1646 = vmatmul.mubr.msk.bf16.vlgmr.msra.gmra.mrb[0].mxu0 %vm90_vm0, %v130_v45 }
 0x144   :  { %1772 = vmatprep.mubr.msk.bf16.mxu0 %vm2013_vm1, %v2012_v46 }
 0x216   :  { %v208_v47 = vpop.f32.mrb[0].mxu0 }
 0x217   :  { %v2126_v48 = vpack.c.bf16 %v208_v47, %v208_v47  ;;  %v210_v49 = vpop.f32.mrb[1].mxu0 }
 0x218   :  { %v212_v50 = vpop.f32.mrb[2].mxu0  ;;  %v2135_v57 = vpack.c.bf16 %v210_v49, %v210_v49 }
 0x219   :  { %v2128_v51 = vpack.c.bf16 %v212_v50, %v212_v50  ;;  %234 = vrot.lane.b32.xlu0 %v2126_v48, %s2014_s1  ;;  %v214_v52 = vpop.f32.mrb[3].mxu0 }
 0x21a   :  { %v2138_v58 = vpack.c.bf16 %v214_v52, %v214_v52  ;;  %v365_v59 = vsel %vm363_vm3, %v2135_v57, 0 }
 0x21b   :  { %283 = vrot.lane.b32.xlu1 %v2128_v51, %s2014_s1 }
 0x21c   :  { %v411_v60 = vsel %vm363_vm3, %v2138_v58, 0 }
 0x28b   :  { %v235_v53 = vpop.permute.xlu0 %234 }
 0x28c   :  { %v241_v54 = vsel %vm236_vm2, %v235_v53, 0 }
 0x28d   :  { %1771 = vmatpush3.bf16.xpose.msra.mxu0 %v241_v54  ;;  %v284_v55 = vpop.permute.xlu1 %283 }
 0x28e   :  { %v289_v56 = vsel %vm236_vm2, %v284_v55, 0  ;;  %1782 = vmatprep.subr.bf16.mxu0 %v2012_v46 }
 0x28f   :  { %1777 = vmatpush3.bf16.xpose.msra.mxu1 %v289_v56 }
 0x290   :  { %1788 = vmatprep.subr.bf16.mxu1 %v2012_v46 }
 0x294   :  { %1773 = vmatmul.mubr.msk.bf16.vlgmr.msra.gmra.mrb[4].mxu0 %vm236_vm2, %v2126_v48 }
 0x295   :  { %1783 = vmatpush3.bf16.msra.mxu0 %v365_v59  ;;  %1784 = vmatprep.mubr.msk.bf16.mxu0 %vm2013_vm1, %v2012_v46 }
 0x296   :  { %1779 = vmatmul.mubr.msk.bf16.vlgmr.msra.gmra.mrb[0].mxu1 %vm236_vm2, %v2128_v51  ;;  %1794 = vmatprep.subr.bf16.mxu0 %v2012_v46 }
 0x297   :  { %1789 = vmatpush3.bf16.msra.mxu1 %v411_v60  ;;  %1790 = vmatprep.mubr.msk.bf16.mxu1 %vm2013_vm1, %v2012_v46 }
 0x298   :  { %1800 = vmatprep.subr.bf16.mxu1 %v2012_v46 }
 0x367   :  { %v277_v63 = vpop.f32.mrb[4].mxu0 }
 0x368   :  { %v333_v0 = vsel %vm2155_vm4, %v277_v63, -1e+30  ;;  %v1774_v3 = vpop.f32.mrb[5].mxu0 }
 0x369   :  { %v280_v4 = vpop.f32.mrb[6].mxu0  ;;  %v325_v5 = vpop.f32.mrb[0].mxu1  ;;  %v336_v6 = vsel %vm335_vm5, %v333_v0, -inf }
 0x36a   :  { %v334_v7 = vsel %vm2155_vm4, %v325_v5, -1e+30  ;;  %v1780_v8 = vpop.f32.mrb[1].mxu1  ;;  %337 = vmax.xlane.f32.xlu1 %v336_v6  ;;  %v1775_v9 = vpop.f32.mrb[7].mxu0 }
 0x36b   :  { %v328_v10 = vpop.f32.mrb[2].mxu1  ;;  %v339_v11 = vsel %vm335_vm5, %v334_v7, -inf }
 0x36c   :  { %340 = vmax.xlane.f32.xlu0 %v339_v11  ;;  %v1781_v12 = vpop.f32.mrb[3].mxu1 }
 0x37b   :  { %506 = vrot.lane.b32.xlu1 %v2128_v51, %s2015_s19 }
 0x3f7   :  { %v338_v13 = vpop.xlane.xlu1 %337 }
 0x3f8   :  { %v342_v14 = vsub.f32 %v333_v0, %v338_v13 }
 0x3f9   :  { %v341_v15 = vpop.xlane.xlu0 %340 }
 0x3fa   :  { %v344_v16 = vmul.f32 1.442695, %v342_v14  ;;  %v343_v17 = vsub.f32 %v334_v7, %v341_v15 }
 0x3fb   :  { %v507_v24 = vpop.permute.xlu1 %506 }
 0x3fc   :  { %1951 = vpow2.f32 %v344_v16  ;;  %v346_v18 = vmul.f32 1.442695, %v343_v17  ;;  %v512_v39 = vsel %vm236_vm2, %v507_v24, 0 }
 0x3fe   :  { %1953 = vpow2.f32 %v346_v18 }
 0x406   :  { %v1952_v19 = vpop.eup %1951 }
 0x407   :  { %v348_v20 = vsel %vm335_vm5, %v1952_v19, 0.0 }
 0x408   :  { %v1954_v21 = vpop.eup %1953  ;;  %349 = vadd.xlane.f32.xlu0 %v348_v20 }
 0x409   :  { %v351_v22 = vsel %vm335_vm5, %v1954_v21, 0.0 }
 0x40a   :  { %352 = vadd.xlane.f32.xlu1 %v351_v22 }
 0x41b   :  { %454 = vrot.lane.b32.xlu1 %v2126_v48, %s2016_s20 }
 0x41e   :  { %456 = vrot.lane.b32.xlu0 %v2126_v48, %s2015_s19 }
 0x41f   :  { %504 = vrot.lane.b32.xlu1 %v2128_v51, %s2016_s20 }
 0x495   :  { %v350_v25 = vpop.xlane.xlu0 %349 }
 0x496   :  { %1955 = vrcp.f32 %v350_v25 }
 0x497   :  { %v353_v26 = vpop.xlane.xlu1 %352 }
 0x498   :  { %1957 = vrcp.f32 %v353_v26  ;;  %v1916_v26 = vld [vmem:[%s2447_s4 + $0x8] sm:$0xff]  }
 0x499   :  { %v457_v30 = vpop.permute.xlu0 %456 }
 0x49a   :  { %v462_v36 = vsel %vm236_vm2, %v457_v30, 0  ;;  %v1915_v30 = vld [vmem:[%s2447_s4] sm:$0xff]  }
 0x49b   :  { %v455_v40 = vpop.permute.xlu1 %454 }
 0x49f   :  { %v505_v41 = vpop.permute.xlu1 %504 }
 0x4a0   :  { %v1956_v27 = vpop.eup %1955 }
 0x4a1   :  { %v356_v28 = vmul.f32 %v1956_v27, %v1952_v19 }
 0x4a2   :  { %v1958_v29 = vpop.eup %1957 }
 0x4a3   :  { %v357_v34 = vmul.f32 %v1958_v29, %v1954_v21  ;;  %v358_v35 = vpack.c.bf16 %v356_v28, %v356_v28 }
 0x4a5   :  { %1785 = vmatmul.mubr.msk.bf16.vlgmr.msra.gmra.mrb[8].mxu0 %vm335_vm5, %v358_v35  ;;  %v359_v38 = vpack.c.bf16 %v357_v34, %v357_v34 }
 0x4a6   :  { %1795 = vmatpush3.bf16.xpose.msra.mxu0 %v462_v36  ;;  %1796 = vmatprep.mubr.msk.bf16.mxu0 %vm2013_vm1, %v2012_v46 }
 0x4a7   :  { %1791 = vmatmul.mubr.msk.bf16.vlgmr.msra.gmra.mrb[4].mxu1 %vm335_vm5, %v359_v38  ;;  %1806 = vmatprep.subr.bf16.mxu0 %v2012_v46 }
 0x4a8   :  { %1801 = vmatpush3.bf16.xpose.msra.mxu1 %v512_v39  ;;  %1802 = vmatprep.mubr.msk.bf16.mxu1 %vm2013_vm1, %v2012_v46 }
 0x4a9   :  { %1812 = vmatprep.subr.bf16.mxu1 %v2012_v46 }
 0x4ad   :  { %1797 = vmatmul.mubr.msk.bf16.vlgmr.msra.gmra.mrb[12].mxu0 %vm236_vm2, %v455_v40 }
 0x4ae   :  { %1808 = vmatprep.mubr.msk.bf16.mxu0 %vm2013_vm1, %v2012_v46 }
 0x4af   :  { %1803 = vmatmul.mubr.msk.bf16.vlgmr.msra.gmra.mrb[8].mxu1 %vm236_vm2, %v505_v41 }
 0x4b0   :  { %1814 = vmatprep.mubr.msk.bf16.mxu1 %vm2013_vm1, %v2012_v46 }
 0x578   :  { %v2189_v42 = vpop.f32.mrb[8].mxu0 }
 0x579   :  { %v1786_v43 = vpop.f32.mrb[9].mxu0 }
 0x57a   :  { %v404_v44 = vpop.f32.mrb[10].mxu0  ;;  %v2191_v45 = vpop.f32.mrb[4].mxu1 }
 0x57b   :  { %v453_v47 = vpack.c.bf16 %v2191_v45, %v2189_v42  ;;  %v1787_v49 = vpop.f32.mrb[11].mxu0  ;;  %v1792_v50 = vpop.f32.mrb[5].mxu1 }
 0x57c   :  { %v450_v52 = vpop.f32.mrb[6].mxu1 }
 0x57d   :  { %v1793_v53 = vpop.f32.mrb[7].mxu1 }
 0x580   :  { %v498_v54 = vpop.f32.mrb[12].mxu0 }
 0x581   :  { %v554_v55 = vsel %vm2155_vm4, %v498_v54, -1e+30  ;;  %v1798_v56 = vpop.f32.mrb[13].mxu0 }
 0x582   :  { %v501_v59 = vpop.f32.mrb[14].mxu0  ;;  %v548_v60 = vpop.f32.mrb[8].mxu1  ;;  %v556_v61 = vsel %vm335_vm5, %v554_v55, -inf }
 0x583   :  { %v555_v63 = vsel %vm2155_vm4, %v548_v60, -1e+30  ;;  %557 = vmax.xlane.f32.xlu0 %v556_v61  ;;  %v1799_v0 = vpop.f32.mrb[15].mxu0  ;;  %v1804_v3 = vpop.f32.mrb[9].mxu1 }
 0x584   :  { %v551_v4 = vpop.f32.mrb[10].mxu1  ;;  %v559_v5 = vsel %vm335_vm5, %v555_v63, -inf }
 0x585   :  { %560 = vmax.xlane.f32.xlu1 %v559_v5  ;;  %v1805_v6 = vpop.f32.mrb[11].mxu1 }
 0x596   :  { %628 = vrot.lane.b32.xlu1 %v2138_v58, %s2016_s20 }
 0x59a   :  { %779 = vrot.lane.b32.xlu1 %v2126_v48, %s2017_s21 }
 0x59e   :  { %829 = vrot.lane.b32.xlu1 %v2128_v51, %s2017_s21 }
 0x5a2   :  { %827 = vrot.lane.b32.xlu1 %v2128_v51, %s2018_s22 }
 0x610   :  { %v558_v7 = vpop.xlane.xlu0 %557 }
 0x611   :  { %v562_v8 = vsub.f32 %v554_v55, %v558_v7 }
 0x612   :  { %v561_v9 = vpop.xlane.xlu1 %560 }
 0x613   :  { %v564_v10 = vmul.f32 1.442695, %v562_v8  ;;  %v563_v11 = vsub.f32 %v555_v63, %v561_v9 }
 0x615   :  { %1959 = vpow2.f32 %v564_v10  ;;  %v566_v12 = vmul.f32 1.442695, %v563_v11 }
 0x616   :  { %v629_v13 = vpop.permute.xlu1 %628 }
 0x617   :  { %1961 = vpow2.f32 %v566_v12  ;;  %v634_v14 = vsel %vm363_vm3, %v629_v13, 0 }
 0x618   :  { %1813 = vmatpush3.bf16.msra.mxu1 %v634_v14 }
 0x619   :  { %1824 = vmatprep.subr.bf16.mxu1 %v2012_v46 }
 0x61a   :  { %v780_v35 = vpop.permute.xlu1 %779 }
 0x61b   :  { %v785_v50 = vsel %vm236_vm2, %v780_v35, 0 }
 0x61e   :  { %v830_v36 = vpop.permute.xlu1 %829 }
 0x61f   :  { %v1960_v15 = vpop.eup %1959  ;;  %v835_v38 = vsel %vm236_vm2, %v830_v36, 0 }
 0x620   :  { %v568_v16 = vsel %vm335_vm5, %v1960_v15, 0.0 }
 0x621   :  { %v1962_v17 = vpop.eup %1961  ;;  %569 = vadd.xlane.f32.xlu0 %v568_v16 }
 0x622   :  { %v571_v18 = vsel %vm335_vm5, %v1962_v17, 0.0  ;;  %v828_v39 = vpop.permute.xlu1 %827 }
 0x625   :  { %572 = vadd.xlane.f32.xlu0 %v571_v18 }
 0x63b   :  { %580 = vrot.lane.b32.xlu0 %v2135_v57, %s2016_s20 }
 0x63f   :  { %777 = vrot.lane.b32.xlu0 %v2126_v48, %s2018_s22 }
 0x6ae   :  { %v570_v19 = vpop.xlane.xlu0 %569 }
 0x6af   :  { %1963 = vrcp.f32 %v570_v19 }
 0x6b2   :  { %v573_v20 = vpop.xlane.xlu0 %572 }
 0x6b3   :  { %1965 = vrcp.f32 %v573_v20 }
 0x6b6   :  { %v581_v21 = vpop.permute.xlu0 %580 }
 0x6b7   :  { %v586_v22 = vsel %vm363_vm3, %v581_v21, 0 }
 0x6b8   :  { %1807 = vmatpush3.bf16.msra.mxu0 %v586_v22 }
 0x6b9   :  { %v1964_v24 = vpop.eup %1963  ;;  %1818 = vmatprep.subr.bf16.mxu0 %v2012_v46 }
 0x6ba   :  { %v576_v25 = vmul.f32 %v1964_v24, %v1960_v15  ;;  %v778_v55 = vpop.permute.xlu0 %777 }
 0x6bc   :  { %v578_v27 = vpack.c.bf16 %v576_v25, %v576_v25 }
 0x6bd   :  { %v1966_v28 = vpop.eup %1965 }
 0x6be   :  { %v577_v29 = vmul.f32 %v1966_v28, %v1962_v17  ;;  %1809 = vmatmul.mubr.msk.bf16.vlgmr.msra.gmra.mrb[16].mxu0 %vm335_vm5, %v578_v27 }
 0x6bf   :  { %1819 = vmatpush3.bf16.msra.mxu0 %v1916_v26  ;;  %1820 = vmatprep.mubr.msk.bf16.mxu0 %vm2013_vm1, %v2012_v46 }
 0x6c0   :  { %v579_v34 = vpack.c.bf16 %v577_v29, %v577_v29  ;;  %1830 = vmatprep.subr.bf16.mxu0 %v2012_v46 }
 0x6c2   :  { %1815 = vmatmul.mubr.msk.bf16.vlgmr.msra.gmra.mrb[12].mxu1 %vm335_vm5, %v579_v34 }
 0x6c3   :  { %1825 = vmatpush3.bf16.msra.mxu1 %v1915_v30  ;;  %1826 = vmatprep.mubr.msk.bf16.mxu1 %vm2013_vm1, %v2012_v46 }
 0x6c4   :  { %1836 = vmatprep.subr.bf16.mxu1 %v2012_v46 }
 0x6ca   :  { %1827 = vmatmul.mubr.msk.bf16.vlgmr.msra.gmra.mrb[16].mxu1 %vm236_vm2, %v453_v47 }
 0x6cb   :  { %1838 = vmatprep.mubr.msk.bf16.mxu1 %vm2013_vm1, %v2012_v46 }
 0x6cc   :  { %1837 = vmatpush3.bf16.xpose.msra.mxu1 %v835_v38 }
 0x6cd   :  { %1848 = vmatprep.subr.bf16.mxu1 %v2012_v46 }
 0x6d3   :  { %1839 = vmatmul.mubr.msk.bf16.vlgmr.msra.gmra.mrb[20].mxu1 %vm236_vm2, %v828_v39 }
 0x6d4   :  { %1850 = vmatprep.mubr.msk.bf16.mxu1 %vm2013_vm1, %v2012_v46 }
 0x791   :  { %v622_v40 = vpop.f32.mrb[16].mxu0 }
 0x792   :  { %v1810_v41 = vpop.f32.mrb[17].mxu0 }
 0x793   :  { %v625_v43 = vpop.f32.mrb[18].mxu0 }
 0x794   :  { %v1811_v42 = vpop.f32.mrb[19].mxu0 }
 0x795   :  { %v670_v44 = vpop.f32.mrb[12].mxu1 }
 0x796   :  { %v676_v45 = vpack.c.bf16 %v670_v44, %v622_v40  ;;  %v1816_v47 = vpop.f32.mrb[13].mxu1 }
 0x797   :  { %v673_v49 = vpop.f32.mrb[14].mxu1 }
 0x798   :  { %v1817_v52 = vpop.f32.mrb[15].mxu1  ;;  %1821 = vmatmul.mubr.msk.bf16.vlgmr.msra.gmra.mrb[20].mxu0 %vm236_vm2, %v676_v45 }
 0x799   :  { %1831 = vmatpush3.bf16.xpose.msra.mxu0 %v785_v50  ;;  %1832 = vmatprep.mubr.msk.bf16.mxu0 %vm2013_vm1, %v2012_v46  ;;  %v1917_v52 = vld [vmem:[%s2447_s4 + $0x10] sm:$0xff]  }
 0x79a   :  { %1842 = vmatprep.subr.bf16.mxu0 %v2012_v46 }
 0x79d   :  { %v770_v53 = vpop.f32.mrb[16].mxu1 }
 0x79e   :  { %v1828_v54 = vpop.f32.mrb[17].mxu1 }
 0x79f   :  { %v773_v56 = vpop.f32.mrb[18].mxu1 }
 0x7a0   :  { %v1829_v59 = vpop.f32.mrb[19].mxu1  ;;  %1833 = vmatmul.mubr.msk.bf16.vlgmr.msra.gmra.mrb[24].mxu0 %vm236_vm2, %v778_v55 }
 0x7a1   :  { %1844 = vmatprep.mubr.msk.bf16.mxu0 %vm2013_vm1, %v2012_v46 }
 0x7a6   :  { %v871_v60 = vpop.f32.mrb[20].mxu1 }
 0x7a7   :  { %v878_v61 = vsel %vm2155_vm4, %v871_v60, -1e+30  ;;  %v1840_v63 = vpop.f32.mrb[21].mxu1 }
 0x7a8   :  { %v874_v0 = vpop.f32.mrb[22].mxu1  ;;  %v882_v3 = vsel %vm335_vm5, %v878_v61, -inf }
 0x7a9   :  { %883 = vmax.xlane.f32.xlu1 %v882_v3  ;;  %v1841_v4 = vpop.f32.mrb[23].mxu1 }
 0x7ba   :  { %951 = vrot.lane.b32.xlu1 %v2138_v58, %s2018_s22 }
 0x7be   :  { %1054 = vrot.lane.b32.xlu1 %v2126_v48, %s2019_s26 }
 0x7c2   :  { %1104 = vrot.lane.b32.xlu1 %v2128_v51, %s2019_s26 }
 0x7c6   :  { %1102 = vrot.lane.b32.xlu1 %v2128_v51, %s2020_s27 }
 0x836   :  { %v884_v5 = vpop.xlane.xlu1 %883 }
 0x837   :  { %v886_v8 = vsub.f32 %v878_v61, %v884_v5 }
 0x839   :  { %v889_v9 = vmul.f32 1.442695, %v886_v8 }
 0x83a   :  { %v952_v6 = vpop.permute.xlu1 %951 }
 0x83b   :  { %v957_v7 = vsel %vm363_vm3, %v952_v6, 0  ;;  %1967 = vpow2.f32 %v889_v9 }
 0x83c   :  { %1849 = vmatpush3.bf16.msra.mxu1 %v957_v7 }
 0x83d   :  { %1860 = vmatprep.subr.bf16.mxu1 %v2012_v46 }
 0x83e   :  { %v1055_v35 = vpop.permute.xlu1 %1054 }
 0x83f   :  { %v1060_v38 = vsel %vm236_vm2, %v1055_v35, 0 }
 0x842   :  { %v1105_v61 = vpop.permute.xlu1 %1104 }
 0x843   :  { %v1110_v5 = vsel %vm236_vm2, %v1105_v61, 0 }
 0x845   :  { %v1968_v20 = vpop.eup %1967 }
 0x846   :  { %v894_v22 = vsel %vm335_vm5, %v1968_v20, 0.0  ;;  %v1103_v7 = vpop.permute.xlu1 %1102 }
 0x86b   :  { %v720_v10 = vpop.f32.mrb[20].mxu0 }
 0x86c   :  { %v2261_v11 = vadd.f32 %v770_v53, %v720_v10  ;;  %v1822_v12 = vpop.f32.mrb[21].mxu0 }
 0x86d   :  { %v723_v13 = vpop.f32.mrb[22].mxu0 }
 0x86e   :  { %v2263_v14 = vadd.f32 %v773_v56, %v723_v13  ;;  %v1823_v15 = vpop.f32.mrb[23].mxu0 }
 0x873   :  { %v821_v16 = vpop.f32.mrb[24].mxu0 }
 0x874   :  { %v877_v51 = vsel %vm2155_vm4, %v821_v16, -1e+30  ;;  %v1834_v17 = vpop.f32.mrb[25].mxu0 }
 0x875   :  { %v824_v18 = vpop.f32.mrb[26].mxu0  ;;  %v879_v19 = vsel %vm335_vm5, %v877_v51, -inf }
 0x876   :  { %880 = vmax.xlane.f32.xlu0 %v879_v19  ;;  %v1835_v21 = vpop.f32.mrb[27].mxu0 }
 0x87a   :  { %895 = vadd.xlane.f32.xlu0 %v894_v22 }
 0x903   :  { %v881_v24 = vpop.xlane.xlu0 %880 }
 0x904   :  { %v885_v25 = vsub.f32 %v877_v51, %v881_v24 }
 0x906   :  { %v887_v26 = vmul.f32 1.442695, %v885_v25 }
 0x907   :  { %v896_v27 = vpop.xlane.xlu0 %895 }
 0x908   :  { %1969 = vpow2.f32 %v887_v26 }
 0x909   :  { %1971 = vrcp.f32 %v896_v27 }
 0x912   :  { %v1970_v28 = vpop.eup %1969 }
 0x913   :  { %v1972_v29 = vpop.eup %1971  ;;  %v891_v30 = vsel %vm335_vm5, %v1970_v28, 0.0 }
 0x914   :  { %v900_v34 = vmul.f32 %v1972_v29, %v1968_v20  ;;  %892 = vadd.xlane.f32.xlu0 %v891_v30 }
 0x916   :  { %v902_v36 = vpack.c.bf16 %v900_v34, %v900_v34 }
 0x918   :  { %1851 = vmatmul.mubr.msk.bf16.vlgmr.msra.gmra.mrb[24].mxu1 %vm335_vm5, %v902_v36 }
 0x919   :  { %1861 = vmatpush3.bf16.xpose.msra.mxu1 %v1060_v38  ;;  %1862 = vmatprep.mubr.msk.bf16.mxu1 %vm2013_vm1, %v2012_v46 }
 0x91a   :  { %1872 = vmatprep.subr.bf16.mxu1 %v2012_v46 }
 0x92a   :  { %903 = vrot.lane.b32.xlu0 %v2135_v57, %s2018_s22 }
 0x92e   :  { %1052 = vrot.lane.b32.xlu0 %v2126_v48, %s2020_s27 }
 0x9a1   :  { %v893_v39 = vpop.xlane.xlu0 %892 }
 0x9a2   :  { %1973 = vrcp.f32 %v893_v39 }
 0x9a5   :  { %v904_v40 = vpop.permute.xlu0 %903 }
 0x9a6   :  { %v909_v41 = vsel %vm363_vm3, %v904_v40, 0 }
 0x9a7   :  { %1843 = vmatpush3.bf16.msra.mxu0 %v909_v41 }
 0x9a8   :  { %1854 = vmatprep.subr.bf16.mxu0 %v2012_v46 }
 0x9a9   :  { %v1053_v43 = vpop.permute.xlu0 %1052 }
 0x9aa   :  { %1863 = vmatmul.mubr.msk.bf16.vlgmr.msra.gmra.mrb[28].mxu1 %vm236_vm2, %v1053_v43 }
 0x9ab   :  { %1874 = vmatprep.mubr.msk.bf16.mxu1 %vm2013_vm1, %v2012_v46 }
 0x9ac   :  { %v1974_v42 = vpop.eup %1973 }
 0x9ad   :  { %v899_v44 = vmul.f32 %v1974_v42, %v1970_v28  ;;  %v1918_v42 = vld [vmem:[%s2447_s4 + $0x18] sm:$0xff]  }
 0x9af   :  { %v901_v45 = vpack.c.bf16 %v899_v44, %v899_v44 }
 0x9b1   :  { %1845 = vmatmul.mubr.msk.bf16.vlgmr.msra.gmra.mrb[28].mxu0 %vm335_vm5, %v901_v45 }
 0x9b2   :  { %1856 = vmatprep.mubr.msk.bf16.mxu0 %vm2013_vm1, %v2012_v46  ;;  %1855 = vmatpush3.bf16.msra.mxu0 %v1917_v52 }
 0x9b3   :  { %1866 = vmatprep.subr.bf16.mxu0 %v2012_v46 }
 0x9eb   :  { %v993_v48 = vpop.f32.mrb[24].mxu1 }
 0x9ec   :  { %v1852_v47 = vpop.f32.mrb[25].mxu1 }
 0x9ed   :  { %v996_v49 = vpop.f32.mrb[26].mxu1 }
 0x9ee   :  { %v1853_v50 = vpop.f32.mrb[27].mxu1 }
 0xa7d   :  { %v1096_v53 = vpop.f32.mrb[28].mxu1 }
 0xa7e   :  { %v1152_v54 = vsel %vm2155_vm4, %v1096_v53, -1e+30  ;;  %v1864_v55 = vpop.f32.mrb[29].mxu1 }
 0xa7f   :  { %v1099_v56 = vpop.f32.mrb[30].mxu1  ;;  %v1154_v59 = vsel %vm335_vm5, %v1152_v54, -inf }
 0xa80   :  { %1155 = vmax.xlane.f32.xlu0 %v1154_v59  ;;  %v1865_v60 = vpop.f32.mrb[31].mxu1 }
 0xa84   :  { %v945_v63 = vpop.f32.mrb[28].mxu0 }
 0xa85   :  { %v999_v0 = vpack.c.bf16 %v993_v48, %v945_v63  ;;  %v1846_v3 = vpop.f32.mrb[29].mxu0 }
 0xa86   :  { %v948_v4 = vpop.f32.mrb[30].mxu0 }
 0xa87   :  { %v1847_v6 = vpop.f32.mrb[31].mxu0  ;;  %1857 = vmatmul.mubr.msk.bf16.vlgmr.msra.gmra.mrb[32].mxu0 %vm236_vm2, %v999_v0 }
 0xa88   :  { %1867 = vmatpush3.bf16.xpose.msra.mxu0 %v1110_v5  ;;  %1868 = vmatprep.mubr.msk.bf16.mxu0 %vm2013_vm1, %v2012_v46 }
 0xa89   :  { %1878 = vmatprep.subr.bf16.mxu0 %v2012_v46 }
 0xa8f   :  { %1869 = vmatmul.mubr.msk.bf16.vlgmr.msra.gmra.mrb[36].mxu0 %vm236_vm2, %v1103_v7 }
 0xa90   :  { %1880 = vmatprep.mubr.msk.bf16.mxu0 %vm2013_vm1, %v2012_v46 }
 0xb0d   :  { %v1156_v8 = vpop.xlane.xlu0 %1155 }
 0xb0e   :  { %v1160_v9 = vsub.f32 %v1152_v54, %v1156_v8  ;;  %v1329_v54 = vsub.s32 4, %v2104_v31 }
 0xb10   :  { %v1162_v10 = vmul.f32 1.442695, %v1160_v9 }
 0xb12   :  { %1975 = vpow2.f32 %v1162_v10 }
 0xb1c   :  { %v1976_v12 = vpop.eup %1975 }
 0xb1d   :  { %v1166_v13 = vsel %vm335_vm5, %v1976_v12, 0.0 }
 0xb1e   :  { %1167 = vadd.xlane.f32.xlu0 %v1166_v13 }
 0xb5a   :  { %v1043_v15 = vpop.f32.mrb[32].mxu0 }
 0xb5b   :  { %v1050_v16 = vadd.f32 %v1043_v15, %v2261_v11  ;;  %v1858_v51 = vpop.f32.mrb[33].mxu0 }
 0xb5c   :  { %v1046_v17 = vpop.f32.mrb[34].mxu0 }
 0xb5d   :  { %v1051_v18 = vadd.f32 %v1046_v17, %v2263_v14  ;;  %v1859_v19 = vpop.f32.mrb[35].mxu0  ;;  %v1921_v17 = vld [vmem:[%s2448_s5 + $0x4] ss:$8 sps:$4 sm:$0xff]  }
 0xb5e   :  { %v1924_v19 = vld [vmem:[%s2448_s5 + $0x14] ss:$8 sps:$4 sm:$0xff]  }
 0xb62   :  { %v1146_v20 = vpop.f32.mrb[36].mxu0 }
 0xb63   :  { %v1153_v21 = vsel %vm2155_vm4, %v1146_v20, -1e+30  ;;  %v1870_v22 = vpop.f32.mrb[37].mxu0  ;;  %v1922_v20 = vld [vmem:[%s2448_s5 + $0x10] ss:$8 sps:$4 sm:$0xff]  }
 0xb64   :  { %v1149_v24 = vpop.f32.mrb[38].mxu0  ;;  %v1157_v25 = vsel %vm335_vm5, %v1153_v21, -inf  ;;  %v1925_v22 = vld [vmem:[%s2448_s5 + $0x20] ss:$8 sps:$4 sm:$0xff]  }
 0xb65   :  { %1158 = vmax.xlane.f32.xlu1 %v1157_v25  ;;  %v1871_v26 = vpop.f32.mrb[39].mxu0  ;;  %v1930_v24 = vld [vmem:[%s2448_s5 + $0x34] ss:$8 sps:$4 sm:$0xff]   ;;  %v1928_v25 = vld [vmem:[%s2448_s5 + $0x30] ss:$8 sps:$4 sm:$0xff]  }
 0xb66   :  { %v1931_v26 = vld [vmem:[%s2449_s6 + $0x40] sm:$0xff]  }
 0xb76   :  { %1226 = vrot.lane.b32.xlu1 %v2138_v58, %s2020_s27 }
 0xbab   :  { %v1168_v34 = vpop.xlane.xlu0 %1167 }
 0xbf2   :  { %v1159_v27 = vpop.xlane.xlu1 %1158 }
 0xbf3   :  { %v1161_v11 = vsub.f32 %v1153_v21, %v1159_v27  ;;  %v1927_v21 = vld [vmem:[%s2448_s5 + $0x24] ss:$8 sps:$4 sm:$0xff]  }
 0xbf4   :  { %v1932_v27 = vld [vmem:[%s2449_s6] sm:$0xff]  }
 0xbf5   :  { %v1164_v28 = vmul.f32 1.442695, %v1161_v11  ;;  %v1933_v11 = vld [vmem:[%s2449_s6 + $0x48] sm:$0xff]  }
 0xbf6   :  { %v1227_v29 = vpop.permute.xlu1 %1226 }
 0xbf7   :  { %1977 = vpow2.f32 %v1164_v28  ;;  %v1232_v14 = vsel %vm363_vm3, %v1227_v29, 0  ;;  %v1934_v28 = vld [vmem:[%s2449_s6 + $0x8] sm:$0xff]   ;;  %v1935_v29 = vld [vmem:[%s2449_s6 + $0x50] sm:$0xff]  }
 0xbf8   :  { %1879 = vmatpush3.bf16.msra.mxu0 %v1232_v14  ;;  %1979 = vrcp.f32 %v1168_v34  ;;  %v1936_v14 = vld [vmem:[%s2449_s6 + $0x10] sm:$0xff]   ;;  %v1939_v34 = vld [vmem:[%s2449_s6 + $0x60] sm:$0xff]  }
 0xbf9   :  { %1428 = vmatprep.subr.bf16.mxu0 %v1921_v17 }
 0xc01   :  { %v1978_v30 = vpop.eup %1977 }
 0xc02   :  { %v1169_v62 = vsel %vm335_vm5, %v1978_v30, 0.0  ;;  %v1980_v35 = vpop.eup %1979 }
 0xc03   :  { %1170 = vadd.xlane.f32.xlu0 %v1169_v62  ;;  %v1174_v58 = vmul.f32 %v1980_v35, %v1976_v12  ;;  %v1938_v62 = vld [vmem:[%s2449_s6 + $0x18] sm:$0xff]   ;;  %v1940_v35 = vld [vmem:[%s2449_s6 + $0x20] sm:$0xff]  }
 0xc05   :  { %v1176_v40 = vpack.c.bf16 %v1174_v58, %v1174_v58 }
 0xc19   :  { %1178 = vrot.lane.b32.xlu0 %v2135_v57, %s2020_s27 }
 0xc90   :  { %v1171_v36 = vpop.xlane.xlu0 %1170 }
 0xc91   :  { %1981 = vrcp.f32 %v1171_v36  ;;  %v1941_v36 = vld [vmem:[%s2449_s6 + $0x68] sm:$0xff]  }
 0xc94   :  { %v1179_v38 = vpop.permute.xlu0 %1178 }
 0xc95   :  { %v1184_v39 = vsel %vm363_vm3, %v1179_v38, 0 }
 0xc96   :  { %1873 = vmatpush3.bf16.msra.mxu1 %v1184_v39 }
 0xc97   :  { %1884 = vmatprep.subr.bf16.mxu1 %v2012_v46 }
 0xc99   :  { %1875 = vmatmul.mubr.msk.bf16.vlgmr.msra.gmra.mrb[32].mxu1 %vm335_vm5, %v1176_v40 }
 0xc9a   :  { %1886 = vmatprep.mubr.msk.bf16.mxu1 %vm2013_vm1, %v2012_v46  ;;  %1885 = vmatpush3.bf16.msra.mxu1 %v1918_v42 }
 0xc9b   :  { %v1982_v41 = vpop.eup %1981  ;;  %1748 = vmatprep.subr.bf16.mxu1 %v1931_v26 }
 0xc9c   :  { %v1175_v57 = vmul.f32 %v1982_v41, %v1978_v30  ;;  %v1937_v30 = vld [vmem:[%s2449_s6 + $0x58] sm:$0xff]  }
 0xc9e   :  { %v1177_v43 = vpack.c.bf16 %v1175_v57, %v1175_v57 }
 0xca0   :  { %1881 = vmatmul.mubr.msk.bf16.vlgmr.msra.gmra.mrb[40].mxu0 %vm335_vm5, %v1177_v43  ;;  %v1363_v43 = vsub.s32 2, %v2104_v31 }
 0xca1   :  { %1460 = vmatprep.mubr.bf16.mxu0 %v2011_v23  ;;  %v1330_v23 = vrot.slane %v2110_v33, %v1329_v54 }
 0xca2   :  { %v1364_v42 = vrot.slane %v2110_v33, %v1363_v43 }
 0xd6c   :  { %v1220_v44 = vpop.f32.mrb[32].mxu1 }
 0xd6d   :  { %v1876_v45 = vpop.f32.mrb[33].mxu1 }
 0xd6e   :  { %v1223_v48 = vpop.f32.mrb[34].mxu1 }
 0xd6f   :  { %v1877_v47 = vpop.f32.mrb[35].mxu1 }
 0xd73   :  { %v1268_v49 = vpop.f32.mrb[40].mxu0 }
 0xd74   :  { %v1274_v50 = vpack.c.bf16 %v1268_v49, %v1220_v44  ;;  %v1882_v52 = vpop.f32.mrb[41].mxu0  ;;  %v1369_v44 = vsub.s32 3, %v2104_v31 }
 0xd75   :  { %v1271_v46 = vpop.f32.mrb[42].mxu0 }
 0xd76   :  { %v1883_v53 = vpop.f32.mrb[43].mxu0  ;;  %1887 = vmatmul.mubr.msk.bf16.vlgmr.msra.gmra.mrb[36].mxu1 %vm236_vm2, %v1274_v50  ;;  %v1370_v52 = vrot.slane %v2110_v33, %v1369_v44 }
 0xd77   :  { %1749 = vmatpush3.bf16.msra.mxu1 %v1932_v27 }
 0xd78   :  { %1750 = vmatprep.subr.bf16.mxu1 %v1933_v11 }
 0xd7b   :  { %1751 = vmatpush3.bf16.msra.mxu1 %v1934_v28 }
 0xd7c   :  { %1752 = vmatprep.subr.bf16.mxu1 %v1935_v29 }
 0xd7f   :  { %1753 = vmatpush3.bf16.msra.mxu1 %v1936_v14 }
 0xd80   :  { %1754 = vmatprep.subr.bf16.mxu1 %v1937_v30 }
 0xd83   :  { %1755 = vmatpush3.bf16.msra.mxu1 %v1938_v62 }
 0xd84   :  { %1756 = vmatprep.subr.bf16.mxu1 %v1939_v34 }
 0xd87   :  { %1757 = vmatpush3.bf16.msra.mxu1 %v1940_v35 }
 0xd88   :  { %1758 = vmatprep.subr.bf16.mxu1 %v1941_v36 }
 0xe49   :  { %v1318_v55 = vpop.f32.mrb[36].mxu1 }
 0xe4a   :  { %v1325_v56 = vadd.f32 %v1318_v55, %v1050_v16  ;;  %v1888_v59 = vpop.f32.mrb[37].mxu1  ;;  %v1942_v55 = vld [vmem:[%s2449_s6 + $0x28] sm:$0xff]  }
 0xe4b   :  { %v1321_v60 = vpop.f32.mrb[38].mxu1  ;;  %1759 = vmatpush3.bf16.msra.mxu1 %v1942_v55  ;;  %v1944_v59 = vld [vmem:[%s2449_s6 + $0x30] sm:$0xff]  }
 0xe4c   :  { %v1331_v61 = vadd.f32 %v1330_v23, %v1325_v56  ;;  %v1326_v63 = vadd.f32 %v1321_v60, %v1051_v18  ;;  %v1889_v0 = vpop.f32.mrb[39].mxu1  ;;  %v1919_v18 = vld [vmem:[%s2448_s5] ss:$8 sps:$4 sm:$0xff]   ;;  %v1943_v56 = vld [vmem:[%s2449_s6 + $0x70] sm:$0xff]   ;;  %v1945_v60 = vld [vmem:[%s2449_s6 + $0x78] sm:$0xff]  }
 0xe4d   :  { %1429 = vmatpush1.bf16.msra.mxu0 %v1919_v18  ;;  %1760 = vmatprep.subr.bf16.mxu1 %v1943_v56 }
 0xe4e   :  { %v2328_v3 = vadd.f32 %v2067_v1, %v1331_v61  ;;  %v1332_v4 = vadd.f32 %v1330_v23, %v1326_v63  ;;  %1430 = vmatprep.subr.bf16.mxu0 %v1924_v19  ;;  %v1946_v61 = vld [vmem:[%s2449_s6 + $0x38] sm:$0xff]   ;;  %v29_v63 = vld [vmem:[%s2445_s2] sm:$0x3]  ;;  %s2021_s2 = smov [#allocation2]  }
 0xe4f   :  { %1761 = vmatpush3.bf16.msra.mxu1 %v1944_v59  ;;  %v1378_v0 = vrot.slane %v29_v63, %v120_v32  ;;  %v1479_v32 = vsub.s32 5, %v2104_v31  ;;  %s1627_s6 = sshll.u32 %s2021_s2, 4  ;;  %s1628_s6 = int_to_ptr.vmem [resolvable:$true] %s1627_s6 }
 0xe50   :  { %v2331_v5 = vadd.f32 %v2069_v2, %v1332_v4  ;;  %v1335_v6 = vsel %vm90_vm0, %v2328_v3, 0.0  ;;  %1762 = vmatprep.subr.bf16.mxu1 %v1945_v60  ;;  %v1382_v4 = vrot.slane %v29_v63, %v126_v37  ;;  %s1987_s27 = scalar_lea.vmem %s1628_s6, 256  ;;  %p1992_p1 = scmp.lt.s32.totalorder %s1628_s6, %s1628_s6 }
 0xe51   :  { %1336 = vadd.xlane.f32.xlu1 %v1335_v6  ;;  %1431 = vmatpush1.bf16.msra.mxu0 %v1922_v20  ;;  %v1480_v37 = vrot.slane %v2110_v33, %v1479_v32  ;;  %p1988_p0 = scmp.ne.s32.totalorder %s1628_s6, %s1987_s27  ;;  %p1993_p2 = scmp.lt.s32.totalorder %s1987_s27, %s1987_s27 }
 0xe52   :  { %v1338_v7 = vsel %vm90_vm0, %v2331_v5, 0.0  ;;  %1432 = vmatprep.subr.bf16.mxu0 %v1927_v21 }
 0xe53   :  { %1339 = vadd.xlane.f32.xlu0 %v1338_v7  ;;  %1763 = vmatpush3.bf16.msra.mxu1 %v1946_v61  ;;  %p1994_p3 = por %p1993_p2, %p1992_p1 }
 0xe55   :  { %1433 = vmatpush1.bf16.msra.mxu0 %v1925_v22  ;;  %p1995_p4 = pnand %p1994_p3, %p1988_p0 }
 0xe56   :  { %1434 = vmatprep.subr.bf16.mxu0 %v1930_v24 }
 0xe59   :  { %1435 = vmatpush1.bf16.msra.mxu0 %v1928_v25 }
 0xede   :  { %v1337_v8 = vpop.xlane.xlu1 %1336 }
 0xedf   :  { %v1341_v9 = vmul.f32 0.015625, %v1337_v8 }
 0xee0   :  { %v1340_v10 = vpop.xlane.xlu0 %1339 }
 0xee1   :  { %v1343_v12 = vsub.f32 %v2328_v3, %v1341_v9  ;;  %v1342_v13 = vmul.f32 0.015625, %v1340_v10 }
 0xee3   :  { %v1344_v1 = vsub.f32 %v2331_v5, %v1342_v13  ;;  %v1345_v15 = vmul.f32 %v1343_v12, %v1343_v12 }
 0xee5   :  { %v1347_v2 = vsel %vm90_vm0, %v1345_v15, 0.0  ;;  %v1346_v16 = vmul.f32 %v1344_v1, %v1344_v1 }
 0xee6   :  { %1348 = vadd.xlane.f32.xlu0 %v1347_v2 }
 0xee7   :  { %v1350_v51 = vsel %vm90_vm0, %v1346_v16, 0.0 }
 0xee8   :  { %1351 = vadd.xlane.f32.xlu1 %v1350_v51 }
 0xf73   :  { %v1349_v58 = vpop.xlane.xlu0 %1348 }
 0xf74   :  { %v1353_v38 = vmul.f32 0.015625, %v1349_v58 }
 0xf75   :  { %v1352_v39 = vpop.xlane.xlu1 %1351 }
 0xf76   :  { %v1355_v40 = vadd.f32 1e-05, %v1353_v38  ;;  %v1354_v41 = vmul.f32 0.015625, %v1352_v39 }
 0xf78   :  { %1983 = vrsqrt.f32 %v1355_v40  ;;  %v1356_v57 = vadd.f32 1e-05, %v1354_v41 }
 0xf7a   :  { %1985 = vrsqrt.f32 %v1356_v57 }
 0xf82   :  { %v1984_v45 = vpop.eup %1983 }
 0xf83   :  { %v1359_v48 = vmul.f32 %v1984_v45, %v1343_v12 }
 0xf84   :  { %v1986_v47 = vpop.eup %1985 }
 0xf85   :  { %v1365_v49 = vmul.f32 %v1364_v42, %v1359_v48  ;;  %v1360_v50 = vmul.f32 %v1986_v47, %v1344_v1 }
 0xf87   :  { %v1366_v46 = vmul.f32 %v1364_v42, %v1360_v50  ;;  %v1371_v53 = vadd.f32 %v1370_v52, %v1365_v49 }
 0xf89   :  { %v1372_v54 = vadd.f32 %v1370_v52, %v1366_v46 }
 0xf8b   :  { %v1373_v23 = vpack.c.bf16 %v1372_v54, %v1371_v53 }
 0xf8d   :  { %1683 = vmatmul.mubr.msk.bf16.vlgmr.msra.gmra.mrb[44].mxu0 %vm90_vm0, %v1373_v23 }
0x1060   :  { %v1462_v6 = vpop.f32.mrb[44].mxu0 }
0x1061   :  { %v1463_v7 = vadd.f32 %v1462_v6, %v1378_v0  ;;  %v1464_v8 = vpop.f32.mrb[45].mxu0 }
0x1062   :  { %v1465_v9 = vadd.f32 %v1464_v8, %v1382_v4  ;;  %v1466_v10 = vpop.f32.mrb[46].mxu0 }
0x1063   :  { %v1467_v12 = vadd.f32 %v1466_v10, %v1378_v0  ;;  %v1468_v13 = vpop.f32.mrb[47].mxu0  ;;  %v1471_v15 = vmax.f32 %v1463_v7, 0.0 }
0x1064   :  { %v1469_v1 = vadd.f32 %v1468_v13, %v1382_v4  ;;  %v1472_v16 = vmax.f32 %v1465_v9, 0.0 }
0x1065   :  { %v1473_v2 = vmax.f32 %v1467_v12, 0.0 }
0x1066   :  { %v1474_v51 = vmax.f32 %v1469_v1, 0.0 }
0x1067   :  { %v1475_v17 = vpack.c.bf16 %v1473_v2, %v1471_v15 }
0x1068   :  { %v1476_v18 = vpack.c.bf16 %v1474_v51, %v1472_v16 }
0x106a   :  { %1609 = vmatprep.mubr.bf16.mxu1 %v1476_v18 }
0x106b   :  { %1610 = vmatmul.mubr.bf16.vlgmr.msra.gmra.mrb[40].mxu1 %v1475_v17 }
0x113e   :  { %v1764_v19 = vpop.f32.mrb[40].mxu1 }
0x113f   :  { %v1765_v20 = vpop.f32.mrb[41].mxu1 }
0x1140   :  { %v1766_v21 = vadd.f32 %v1765_v20, %v1764_v19  ;;  %v1767_v22 = vpop.f32.mrb[42].mxu1 }
0x1141   :  { %v1768_v24 = vpop.f32.mrb[43].mxu1 }
0x1142   :  { %v1612_v25 = vadd.f32 %v1766_v21, %v1480_v37  ;;  %v1769_v26 = vadd.f32 %v1768_v24, %v1767_v22 }
0x1144   :  { %v1618_v27 = vadd.f32 %v1612_v25, %v2328_v3  ;;  %v1615_v11 = vadd.f32 %v1769_v26, %v1480_v37 }
0x1146   :  { %1620 = vst.msk [vmem:[#allocation2] sm:$0xff] %vm90_vm0, %v1618_v27  ;;  %v1619_v28 = vadd.f32 %v1615_v11, %v2331_v5 }
0x1148   :  { %1621 = vst.msk [vmem:[#allocation2 + $0x8] sm:$0xff] %vm90_vm0, %v1619_v28 }
0x1149   :  { %1998 = shalt.err (!%p1995_p4)
}
0x114a   :  { %s1999_s29 = scalar_lea.hbm %s2450_s7, 256 }
0x114b   :  { %p2000_p5 = scmp.ne.s32.totalorder %s2450_s7, %s1999_s29  ;;  %p2003_p6 = scmp.lt.u32.totalorder %s1999_s29, %s2450_s7 }
0x114d   :  { %p2005_p7 = pnand %p2003_p6, %p2000_p5 }
0x114f   :  { %2008 = shalt.err (!%p2005_p7)
}
0x1150   :  { %s2022_s10 = smov 128   ;;  %s2023_s11 = smov 8  }
0x1151   :  { %1633 = dma.vmem_to_hbm [thread:$0]  %s1628_s6, 256, %s2450_s7, [#allocation3], %s2022_s10, %s2022_s10, %s2023_s11  }
0x1152   :  { %2009 = dma.done.wait [#allocation3], 256  }
0x1153   :  { %2010 = vsyncadd [#allocation3], 4294967040 }
0x1154   :  { %1637 = vsyncpa [#allocation3], 1 }

</bundles_post_ra>
